<compile_context>
chip_gen: v5e
topology: v5e:2x2
jax: 0.10.0
libtpu: 0.0.40
codegen_flags: <defaults>
</compile_context>

<pallas_src>
import math
import numpy as np
import jax
import jax.numpy as jnp
from jax.experimental import pallas as pl
from jax.experimental.pallas import tpu as pltpu

B, L, OUT = 2, 64, 128          # batch, eeg length, out_dim (module default)
BL = B * L
EPS = 1e-5
NEG_SLOPE = 0.01


def _encoder_kernel(a1_ref, w1_ref, w2_ref, w3_ref,
                    g1_ref, be1_ref, g2_ref, be2_ref, g3_ref, be3_ref,
                    out_ref):
    f32 = jnp.float32
    bf16 = jnp.bfloat16

    def bn(h, g_ref, b_ref):
        # training-mode batch stats (two-pass, biased var like torch), folded
        # into a single scale/shift -> only 2 VALU ops on the (BL, C) tensor.
        mean = jnp.mean(h, axis=0, keepdims=True)
        var = jnp.mean((h - mean) ** 2, axis=0, keepdims=True)
        scale = g_ref[...] * jax.lax.rsqrt(var + EPS)       # rsqrt -> EUP slot
        shift = b_ref[...] - mean * scale
        return h * scale + shift

    def leaky(h):
        # mul + max (2 VALU ops) instead of cmp + mul + select
        return jnp.maximum(h, NEG_SLOPE * h)

    # ---- hoisted per-row validity masks (position inside each length-L seg) --
    l_idx = jax.lax.broadcasted_iota(jnp.int32, (BL, 1), 0) % L
    m_m2 = (l_idx >= 2).astype(f32)        # tap d = -2
    m_m1 = (l_idx >= 1).astype(f32)        # tap d = -1
    m_p1 = (l_idx < L - 1).astype(f32)     # tap d = +1
    m_p2 = (l_idx < L - 2).astype(f32)     # tap d = +2

    def tap(h, d, m):
        # s[l] = h[l + d], zeroed at segment (batch / zero-pad) boundaries
        s = pltpu.roll(h, shift=(-d) % BL, axis=0)
        return s * m

    # ---- conv1 (C_in=1, k=7, pad=3): single (BL,8)@(8,32) matmul -------------
    h1 = jnp.dot(a1_ref[...], w1_ref[...], preferred_element_type=f32)
    h1 = leaky(bn(h1, g1_ref, be1_ref))

    # ---- conv2 (32->64, k=5, pad=2): lane-concat im2col + ONE MXU matmul -----
    a2 = jnp.concatenate(
        [tap(h1, -2, m_m2), tap(h1, -1, m_m1), h1,
         tap(h1, 1, m_p1), tap(h1, 2, m_p2)], axis=1).astype(bf16)   # (BL,160)
    h2 = jnp.dot(a2, w2_ref[...], preferred_element_type=f32)
    h2 = leaky(bn(h2, g2_ref, be2_ref))

    # ---- conv3 (64->OUT, k=3, pad=1): lane-concat im2col + ONE MXU matmul ----
    a3 = jnp.concatenate(
        [tap(h2, -1, m_m1), h2, tap(h2, 1, m_p1)], axis=1).astype(bf16)  # (BL,192)
    pre3 = bn(jnp.dot(a3, w3_ref[...], preferred_element_type=f32),
              g3_ref, be3_ref)
    # TODO(synk): torch forward prints host-side diagnostics (min/max of pre3,
    # mean/std of the pooled output); these print()s are omitted in the kernel.
    h3 = leaky(pre3)

    # ---- AdaptiveMaxPool1d(1): max over length per batch element -------------
    out_ref[...] = jnp.max(h3.reshape(B, L, OUT), axis=1)


def _full_spec(shape):
    nd = len(shape)
    return pl.BlockSpec(shape, lambda i, _nd=nd: (0,) * _nd)


def _prep_params(params):
    """One-time re-layout of weights for the kernel (bf16 MXU operands)."""
    w1, w2, w3, g1, be1, g2, be2, g3, be3 = params
    w1p = jnp.zeros((8, 32), jnp.bfloat16).at[:7, :].set(w1.astype(jnp.bfloat16))
    w2f = w2.reshape(5 * 32, 64).astype(jnp.bfloat16)      # rows: k=0..4 -> d=k-2
    w3f = w3.reshape(3 * 64, OUT).astype(jnp.bfloat16)     # rows: k=0..2 -> d=k-1
    return (w1p, w2f, w3f, g1, be1, g2, be2, g3, be3)


@jax.jit
def eeg_encoder_forward(x, prepped):
    w1p, w2f, w3f, g1, be1, g2, be2, g3, be3 = prepped
    # conv1 im2col (C_in=1, k=7, pad=3) -> (B*L, 8), lane 7 zero-padded.
    xp = jnp.pad(x, ((0, 0), (3, 3)))
    a1 = jnp.stack([xp[:, k:k + L] for k in range(7)], axis=-1)      # (B, L, 7)
    a1 = jnp.pad(a1, ((0, 0), (0, 0), (0, 1))).reshape(BL, 8).astype(jnp.bfloat16)

    ins = (a1, w1p, w2f, w3f, g1, be1, g2, be2, g3, be3)
    return pl.pallas_call(
        _encoder_kernel,
        out_shape=jax.ShapeDtypeStruct((B, OUT), jnp.float32),
        grid=(1,),
        in_specs=[_full_spec(a.shape) for a in ins],
        out_specs=_full_spec((B, OUT)),
    )(*ins)


def _init_params(key):
    # Kaiming normal, nonlinearity='leaky_relu' (same weights feed kernel & ref)
    gain = math.sqrt(2.0 / (1.0 + NEG_SLOPE ** 2))
    k1, k2, k3 = jax.random.split(key, 3)
    w1 = (gain / math.sqrt(1 * 7)) * jax.random.normal(k1, (7, 32), jnp.float32)
    w2 = (gain / math.sqrt(32 * 5)) * jax.random.normal(k2, (5, 32, 64), jnp.float32)
    w3 = (gain / math.sqrt(64 * 3)) * jax.random.normal(k3, (3, 64, OUT), jnp.float32)
    g1, be1 = jnp.ones((1, 32), jnp.float32), jnp.zeros((1, 32), jnp.float32)
    g2, be2 = jnp.ones((1, 64), jnp.float32), jnp.zeros((1, 64), jnp.float32)
    g3, be3 = jnp.ones((1, OUT), jnp.float32), jnp.zeros((1, OUT), jnp.float32)
    return (w1, w2, w3, g1, be1, g2, be2, g3, be3)


def _ref_forward_np(x, params):
    """Pure-numpy reference mirroring the torch forward (training-mode BN)."""
    w1, w2, w3, g1, be1, g2, be2, g3, be3 = [np.asarray(p, np.float32) for p in params]
    x = np.asarray(x, np.float32)

    def bn(h, g, b):
        m = h.mean(axis=(0, 1))
        v = ((h - m) ** 2).mean(axis=(0, 1))
        return (h - m) / np.sqrt(v + EPS) * g.reshape(-1) + b.reshape(-1)

    def leaky(h):
        return np.where(h > 0, h, NEG_SLOPE * h)

    xp = np.pad(x, ((0, 0), (3, 3)))
    h1 = np.zeros((B, L, 32), np.float32)
    for k in range(7):
        h1 += xp[:, k:k + L, None] * w1[k][None, None, :]
    h1 = leaky(bn(h1, g1, be1))

    def conv_same(h, w):
        K = w.shape[0]
        pad = K // 2
        hp = np.pad(h, ((0, 0), (pad, pad), (0, 0)))
        y = np.zeros((B, L, w.shape[-1]), np.float32)
        for k in range(K):
            y += np.einsum('blc,cd->bld', hp[:, k:k + L, :], w[k])
        return y

    h2 = leaky(bn(conv_same(h1, w2), g2, be2))
    h3 = leaky(bn(conv_same(h2, w3), g3, be3))
    return h3.max(axis=1)


if __name__ == "__main__":
    key = jax.random.PRNGKey(0)
    kx, kp = jax.random.split(key)
    x = jax.random.normal(kx, (B, L), jnp.float32)   # module input: (batch, eeg_length)
    params = _init_params(kp)
    prepped = _prep_params(params)

    out = eeg_encoder_forward(x, prepped)
    out = jax.block_until_ready(out)

    ref = _ref_forward_np(np.asarray(x), params)
    assert out.shape == (B, OUT)
    np.testing.assert_allclose(np.asarray(out), ref, rtol=2e-2, atol=2e-2)
    print("KERNEL_OK")
</pallas_src>

<mosaic_0001>
module attributes {stable_mosaic.version = 11 : i64} {
  func.func @_encoder_kernel(%arg0: i32, %arg1: memref<128x8xbf16, #tpu.memory_space<vmem>>, %arg2: memref<8x32xbf16, #tpu.memory_space<vmem>>, %arg3: memref<160x64xbf16, #tpu.memory_space<vmem>>, %arg4: memref<192x128xbf16, #tpu.memory_space<vmem>>, %arg5: memref<1x32xf32, #tpu.memory_space<vmem>>, %arg6: memref<1x32xf32, #tpu.memory_space<vmem>>, %arg7: memref<1x64xf32, #tpu.memory_space<vmem>>, %arg8: memref<1x64xf32, #tpu.memory_space<vmem>>, %arg9: memref<1x128xf32, #tpu.memory_space<vmem>>, %arg10: memref<1x128xf32, #tpu.memory_space<vmem>>, %arg11: memref<2x128xf32, #tpu.memory_space<vmem>>) attributes {dimension_semantics = [#tpu.dimension_semantics<arbitrary>], iteration_bounds = array<i64: 1>, scalar_prefetch = 0 : i64, scratch_operands = 0 : i64, tpu.core_type = #tpu.core_type<tc>, window_params = [{pipeline_mode = #tpu.pipeline_mode<synchronous>, transform_indices = @transform_0, window_bounds = array<i64: 128, 8>}, {pipeline_mode = #tpu.pipeline_mode<synchronous>, transform_indices = @transform_1, window_bounds = array<i64: 8, 32>}, {pipeline_mode = #tpu.pipeline_mode<synchronous>, transform_indices = @transform_2, window_bounds = array<i64: 160, 64>}, {pipeline_mode = #tpu.pipeline_mode<synchronous>, transform_indices = @transform_3, window_bounds = array<i64: 192, 128>}, {pipeline_mode = #tpu.pipeline_mode<synchronous>, transform_indices = @transform_4, window_bounds = array<i64: 1, 32>}, {pipeline_mode = #tpu.pipeline_mode<synchronous>, transform_indices = @transform_5, window_bounds = array<i64: 1, 32>}, {pipeline_mode = #tpu.pipeline_mode<synchronous>, transform_indices = @transform_6, window_bounds = array<i64: 1, 64>}, {pipeline_mode = #tpu.pipeline_mode<synchronous>, transform_indices = @transform_7, window_bounds = array<i64: 1, 64>}, {pipeline_mode = #tpu.pipeline_mode<synchronous>, transform_indices = @transform_8, window_bounds = array<i64: 1, 128>}, {pipeline_mode = #tpu.pipeline_mode<synchronous>, transform_indices = @transform_9, window_bounds = array<i64: 1, 128>}, {pipeline_mode = #tpu.pipeline_mode<synchronous>, transform_indices = @transform_10, window_bounds = array<i64: 2, 128>}]} {
    %0 = tpu.iota {dimensions = array<i32: 0>} : vector<128x1xi32>
    %c64_i32 = arith.constant 64 : i32
    %c0_i32 = arith.constant 0 : i32
    %1 = arith.cmpi eq, %c64_i32, %c0_i32 : i32
    %c1_i32 = arith.constant 1 : i32
    %2 = arith.select %1, %c1_i32, %c64_i32 : i32
    %3 = vector.broadcast %2 : i32 to vector<128x1xi32>
    %4 = arith.remsi %0, %3 : vector<128x1xi32>
    %c0_i32_0 = arith.constant 0 : i32
    %5 = vector.broadcast %c0_i32_0 : i32 to vector<128x1xi32>
    %6 = arith.cmpi ne, %4, %5 : vector<128x1xi32>
    %c0_i32_1 = arith.constant 0 : i32
    %7 = vector.broadcast %c0_i32_1 : i32 to vector<128x1xi32>
    %8 = arith.cmpi slt, %4, %7 : vector<128x1xi32>
    %c0_i32_2 = arith.constant 0 : i32
    %9 = arith.cmpi slt, %2, %c0_i32_2 : i32
    %10 = vector.broadcast %9 : i1 to vector<128x1xi1>
    %11 = vector.broadcast %10 : vector<128x1xi1> to vector<128x1xi1>
    %12 = arith.xori %8, %11 : vector<128x1xi1>
    %13 = arith.andi %12, %6 : vector<128x1xi1>
    %14 = vector.broadcast %2 : i32 to vector<128x1xi32>
    %15 = arith.addi %4, %14 : vector<128x1xi32>
    %16 = arith.select %13, %15, %4 : vector<128x1xi1>, vector<128x1xi32>
    %c2_i32 = arith.constant 2 : i32
    %17 = vector.broadcast %c2_i32 : i32 to vector<128x1xi32>
    %18 = arith.cmpi sge, %16, %17 : vector<128x1xi32>
    %19 = arith.extui %18 : vector<128x1xi1> to vector<128x1xi32>
    %20 = arith.sitofp %19 : vector<128x1xi32> to vector<128x1xf32>
    %c1_i32_3 = arith.constant 1 : i32
    %21 = vector.broadcast %c1_i32_3 : i32 to vector<128x1xi32>
    %22 = arith.cmpi sge, %16, %21 : vector<128x1xi32>
    %23 = arith.extui %22 : vector<128x1xi1> to vector<128x1xi32>
    %24 = arith.sitofp %23 : vector<128x1xi32> to vector<128x1xf32>
    %c63_i32 = arith.constant 63 : i32
    %25 = vector.broadcast %c63_i32 : i32 to vector<128x1xi32>
    %26 = arith.cmpi slt, %16, %25 : vector<128x1xi32>
    %27 = arith.extui %26 : vector<128x1xi1> to vector<128x1xi32>
    %28 = arith.sitofp %27 : vector<128x1xi32> to vector<128x1xf32>
    %c62_i32 = arith.constant 62 : i32
    %29 = vector.broadcast %c62_i32 : i32 to vector<128x1xi32>
    %30 = arith.cmpi slt, %16, %29 : vector<128x1xi32>
    %31 = arith.extui %30 : vector<128x1xi1> to vector<128x1xi32>
    %32 = arith.sitofp %31 : vector<128x1xi32> to vector<128x1xf32>
    %c0 = arith.constant 0 : index
    %c0_4 = arith.constant 0 : index
    %33 = vector.load %arg1[%c0, %c0_4] : memref<128x8xbf16, #tpu.memory_space<vmem>>, vector<128x8xbf16>
    %c0_5 = arith.constant 0 : index
    %c0_6 = arith.constant 0 : index
    %34 = vector.load %arg2[%c0_5, %c0_6] : memref<8x32xbf16, #tpu.memory_space<vmem>>, vector<8x32xbf16>
    %cst = arith.constant dense<0.000000e+00> : vector<128x32xf32>
    %35 = tpu.matmul %33, %34, %cst {dimension_numbers = #tpu.dot_dimension_numbers<[1], [0], [0], [1], [0, 0, 1, 1], [], []>} : vector<128x8xbf16>, vector<8x32xbf16>, vector<128x32xf32> -> vector<128x32xf32>
    %cst_7 = arith.constant dense<0.000000e+00> : vector<32xf32>
    %36 = vector.multi_reduction <add>, %35, %cst_7 [0] : vector<128x32xf32> to vector<32xf32>
    %37 = vector.shape_cast %36 : vector<32xf32> to vector<1x32xf32>
    %cst_8 = arith.constant 1.280000e+02 : f32
    %38 = vector.broadcast %cst_8 : f32 to vector<1x32xf32>
    %39 = arith.divf %37, %38 : vector<1x32xf32>
    %40 = vector.broadcast %39 : vector<1x32xf32> to vector<128x32xf32>
    %41 = arith.subf %35, %40 : vector<128x32xf32>
    %42 = arith.mulf %41, %41 : vector<128x32xf32>
    %cst_9 = arith.constant dense<0.000000e+00> : vector<32xf32>
    %43 = vector.multi_reduction <add>, %42, %cst_9 [0] : vector<128x32xf32> to vector<32xf32>
    %44 = vector.shape_cast %43 : vector<32xf32> to vector<1x32xf32>
    %cst_10 = arith.constant 1.280000e+02 : f32
    %45 = vector.broadcast %cst_10 : f32 to vector<1x32xf32>
    %46 = arith.divf %44, %45 : vector<1x32xf32>
    %c0_11 = arith.constant 0 : index
    %c0_12 = arith.constant 0 : index
    %47 = vector.load %arg5[%c0_11, %c0_12] : memref<1x32xf32, #tpu.memory_space<vmem>>, vector<1x32xf32>
    %cst_13 = arith.constant 9.99999974E-6 : f32
    %48 = vector.broadcast %cst_13 : f32 to vector<1x32xf32>
    %49 = arith.addf %46, %48 : vector<1x32xf32>
    %50 = math.rsqrt %49 : vector<1x32xf32>
    %51 = arith.mulf %47, %50 : vector<1x32xf32>
    %c0_14 = arith.constant 0 : index
    %c0_15 = arith.constant 0 : index
    %52 = vector.load %arg6[%c0_14, %c0_15] : memref<1x32xf32, #tpu.memory_space<vmem>>, vector<1x32xf32>
    %53 = arith.mulf %39, %51 : vector<1x32xf32>
    %54 = arith.subf %52, %53 : vector<1x32xf32>
    %55 = vector.broadcast %51 : vector<1x32xf32> to vector<128x32xf32>
    %56 = arith.mulf %35, %55 : vector<128x32xf32>
    %57 = vector.broadcast %54 : vector<1x32xf32> to vector<128x32xf32>
    %58 = arith.addf %56, %57 : vector<128x32xf32>
    %cst_16 = arith.constant 0.00999999977 : f32
    %59 = vector.broadcast %cst_16 : f32 to vector<128x32xf32>
    %60 = arith.mulf %59, %58 : vector<128x32xf32>
    %61 = arith.maximumf %58, %60 : vector<128x32xf32>
    %c2_i32_17 = arith.constant 2 : i32
    %62 = tpu.dynamic_rotate %61 by %c2_i32_17 dim 0 : vector<128x32xf32>, i32 -> vector<128x32xf32>
    %63 = vector.broadcast %20 : vector<128x1xf32> to vector<128x32xf32>
    %64 = arith.mulf %62, %63 : vector<128x32xf32>
    %c1_i32_18 = arith.constant 1 : i32
    %65 = tpu.dynamic_rotate %61 by %c1_i32_18 dim 0 : vector<128x32xf32>, i32 -> vector<128x32xf32>
    %66 = vector.broadcast %24 : vector<128x1xf32> to vector<128x32xf32>
    %67 = arith.mulf %65, %66 : vector<128x32xf32>
    %c127_i32 = arith.constant 127 : i32
    %68 = tpu.dynamic_rotate %61 by %c127_i32 dim 0 : vector<128x32xf32>, i32 -> vector<128x32xf32>
    %69 = vector.broadcast %28 : vector<128x1xf32> to vector<128x32xf32>
    %70 = arith.mulf %68, %69 : vector<128x32xf32>
    %c126_i32 = arith.constant 126 : i32
    %71 = tpu.dynamic_rotate %61 by %c126_i32 dim 0 : vector<128x32xf32>, i32 -> vector<128x32xf32>
    %72 = vector.broadcast %32 : vector<128x1xf32> to vector<128x32xf32>
    %73 = arith.mulf %71, %72 : vector<128x32xf32>
    %74 = tpu.concatenate %64, %67, %61, %70, %73 in 1 : vector<128x32xf32>, vector<128x32xf32>, vector<128x32xf32>, vector<128x32xf32>, vector<128x32xf32> -> vector<128x160xf32>
    %75 = arith.truncf %74 : vector<128x160xf32> to vector<128x160xbf16>
    %c0_19 = arith.constant 0 : index
    %c0_20 = arith.constant 0 : index
    %76 = vector.load %arg3[%c0_19, %c0_20] : memref<160x64xbf16, #tpu.memory_space<vmem>>, vector<160x64xbf16>
    %cst_21 = arith.constant dense<0.000000e+00> : vector<128x64xf32>
    %77 = tpu.matmul %75, %76, %cst_21 {dimension_numbers = #tpu.dot_dimension_numbers<[1], [0], [0], [1], [0, 0, 1, 1], [], []>} : vector<128x160xbf16>, vector<160x64xbf16>, vector<128x64xf32> -> vector<128x64xf32>
    %cst_22 = arith.constant dense<0.000000e+00> : vector<64xf32>
    %78 = vector.multi_reduction <add>, %77, %cst_22 [0] : vector<128x64xf32> to vector<64xf32>
    %79 = vector.shape_cast %78 : vector<64xf32> to vector<1x64xf32>
    %cst_23 = arith.constant 1.280000e+02 : f32
    %80 = vector.broadcast %cst_23 : f32 to vector<1x64xf32>
    %81 = arith.divf %79, %80 : vector<1x64xf32>
    %82 = vector.broadcast %81 : vector<1x64xf32> to vector<128x64xf32>
    %83 = arith.subf %77, %82 : vector<128x64xf32>
    %84 = arith.mulf %83, %83 : vector<128x64xf32>
    %cst_24 = arith.constant dense<0.000000e+00> : vector<64xf32>
    %85 = vector.multi_reduction <add>, %84, %cst_24 [0] : vector<128x64xf32> to vector<64xf32>
    %86 = vector.shape_cast %85 : vector<64xf32> to vector<1x64xf32>
    %cst_25 = arith.constant 1.280000e+02 : f32
    %87 = vector.broadcast %cst_25 : f32 to vector<1x64xf32>
    %88 = arith.divf %86, %87 : vector<1x64xf32>
    %c0_26 = arith.constant 0 : index
    %c0_27 = arith.constant 0 : index
    %89 = vector.load %arg7[%c0_26, %c0_27] : memref<1x64xf32, #tpu.memory_space<vmem>>, vector<1x64xf32>
    %cst_28 = arith.constant 9.99999974E-6 : f32
    %90 = vector.broadcast %cst_28 : f32 to vector<1x64xf32>
    %91 = arith.addf %88, %90 : vector<1x64xf32>
    %92 = math.rsqrt %91 : vector<1x64xf32>
    %93 = arith.mulf %89, %92 : vector<1x64xf32>
    %c0_29 = arith.constant 0 : index
    %c0_30 = arith.constant 0 : index
    %94 = vector.load %arg8[%c0_29, %c0_30] : memref<1x64xf32, #tpu.memory_space<vmem>>, vector<1x64xf32>
    %95 = arith.mulf %81, %93 : vector<1x64xf32>
    %96 = arith.subf %94, %95 : vector<1x64xf32>
    %97 = vector.broadcast %93 : vector<1x64xf32> to vector<128x64xf32>
    %98 = arith.mulf %77, %97 : vector<128x64xf32>
    %99 = vector.broadcast %96 : vector<1x64xf32> to vector<128x64xf32>
    %100 = arith.addf %98, %99 : vector<128x64xf32>
    %cst_31 = arith.constant 0.00999999977 : f32
    %101 = vector.broadcast %cst_31 : f32 to vector<128x64xf32>
    %102 = arith.mulf %101, %100 : vector<128x64xf32>
    %103 = arith.maximumf %100, %102 : vector<128x64xf32>
    %c1_i32_32 = arith.constant 1 : i32
    %104 = tpu.dynamic_rotate %103 by %c1_i32_32 dim 0 : vector<128x64xf32>, i32 -> vector<128x64xf32>
    %105 = vector.broadcast %24 : vector<128x1xf32> to vector<128x64xf32>
    %106 = arith.mulf %104, %105 : vector<128x64xf32>
    %c127_i32_33 = arith.constant 127 : i32
    %107 = tpu.dynamic_rotate %103 by %c127_i32_33 dim 0 : vector<128x64xf32>, i32 -> vector<128x64xf32>
    %108 = vector.broadcast %28 : vector<128x1xf32> to vector<128x64xf32>
    %109 = arith.mulf %107, %108 : vector<128x64xf32>
    %110 = tpu.concatenate %106, %103, %109 in 1 : vector<128x64xf32>, vector<128x64xf32>, vector<128x64xf32> -> vector<128x192xf32>
    %111 = arith.truncf %110 : vector<128x192xf32> to vector<128x192xbf16>
    %c0_34 = arith.constant 0 : index
    %c0_35 = arith.constant 0 : index
    %112 = vector.load %arg4[%c0_34, %c0_35] : memref<192x128xbf16, #tpu.memory_space<vmem>>, vector<192x128xbf16>
    %cst_36 = arith.constant dense<0.000000e+00> : vector<128x128xf32>
    %113 = tpu.matmul %111, %112, %cst_36 {dimension_numbers = #tpu.dot_dimension_numbers<[1], [0], [0], [1], [0, 0, 1, 1], [], []>} : vector<128x192xbf16>, vector<192x128xbf16>, vector<128x128xf32> -> vector<128x128xf32>
    %cst_37 = arith.constant dense<0.000000e+00> : vector<128xf32>
    %114 = vector.multi_reduction <add>, %113, %cst_37 [0] : vector<128x128xf32> to vector<128xf32>
    %115 = vector.shape_cast %114 : vector<128xf32> to vector<1x128xf32>
    %cst_38 = arith.constant 1.280000e+02 : f32
    %116 = vector.broadcast %cst_38 : f32 to vector<1x128xf32>
    %117 = arith.divf %115, %116 : vector<1x128xf32>
    %118 = vector.broadcast %117 : vector<1x128xf32> to vector<128x128xf32>
    %119 = arith.subf %113, %118 : vector<128x128xf32>
    %120 = arith.mulf %119, %119 : vector<128x128xf32>
    %cst_39 = arith.constant dense<0.000000e+00> : vector<128xf32>
    %121 = vector.multi_reduction <add>, %120, %cst_39 [0] : vector<128x128xf32> to vector<128xf32>
    %122 = vector.shape_cast %121 : vector<128xf32> to vector<1x128xf32>
    %cst_40 = arith.constant 1.280000e+02 : f32
    %123 = vector.broadcast %cst_40 : f32 to vector<1x128xf32>
    %124 = arith.divf %122, %123 : vector<1x128xf32>
    %c0_41 = arith.constant 0 : index
    %c0_42 = arith.constant 0 : index
    %125 = vector.load %arg9[%c0_41, %c0_42] : memref<1x128xf32, #tpu.memory_space<vmem>>, vector<1x128xf32>
    %cst_43 = arith.constant 9.99999974E-6 : f32
    %126 = vector.broadcast %cst_43 : f32 to vector<1x128xf32>
    %127 = arith.addf %124, %126 : vector<1x128xf32>
    %128 = math.rsqrt %127 : vector<1x128xf32>
    %129 = arith.mulf %125, %128 : vector<1x128xf32>
    %c0_44 = arith.constant 0 : index
    %c0_45 = arith.constant 0 : index
    %130 = vector.load %arg10[%c0_44, %c0_45] : memref<1x128xf32, #tpu.memory_space<vmem>>, vector<1x128xf32>
    %131 = arith.mulf %117, %129 : vector<1x128xf32>
    %132 = arith.subf %130, %131 : vector<1x128xf32>
    %133 = vector.broadcast %129 : vector<1x128xf32> to vector<128x128xf32>
    %134 = arith.mulf %113, %133 : vector<128x128xf32>
    %135 = vector.broadcast %132 : vector<1x128xf32> to vector<128x128xf32>
    %136 = arith.addf %134, %135 : vector<128x128xf32>
    %cst_46 = arith.constant 0.00999999977 : f32
    %137 = vector.broadcast %cst_46 : f32 to vector<128x128xf32>
    %138 = arith.mulf %137, %136 : vector<128x128xf32>
    %139 = arith.maximumf %136, %138 : vector<128x128xf32>
    %140 = vector.shape_cast %139 : vector<128x128xf32> to vector<2x64x128xf32>
    %cst_47 = arith.constant dense<0xFF800000> : vector<2x128xf32>
    %141 = vector.multi_reduction <maximumf>, %140, %cst_47 [1] : vector<2x64x128xf32> to vector<2x128xf32>
    %c0_48 = arith.constant 0 : index
    %c0_49 = arith.constant 0 : index
    %142 = vector.load %arg11[%c0_48, %c0_49] : memref<2x128xf32, #tpu.memory_space<vmem>>, vector<2x128xf32>
    tpu.vector_store %arg11[%c0_48, %c0_49], %141 {strides = array<i32>} : memref<2x128xf32, #tpu.memory_space<vmem>>, vector<2x128xf32>,
    return
  }
  func.func @transform_0(%arg0: i32) -> (i32, i32) {
    %c0_i32 = arith.constant 0 : i32
    %c0_i32_0 = arith.constant 0 : i32
    %c0_i32_1 = arith.constant 0 : i32
    return %c0_i32, %c0_i32_0 : i32, i32
  }
  func.func @transform_1(%arg0: i32) -> (i32, i32) {
    %c0_i32 = arith.constant 0 : i32
    %c0_i32_0 = arith.constant 0 : i32
    %c0_i32_1 = arith.constant 0 : i32
    return %c0_i32, %c0_i32_0 : i32, i32
  }
  func.func @transform_2(%arg0: i32) -> (i32, i32) {
    %c0_i32 = arith.constant 0 : i32
    %c0_i32_0 = arith.constant 0 : i32
    %c0_i32_1 = arith.constant 0 : i32
    return %c0_i32, %c0_i32_0 : i32, i32
  }
  func.func @transform_3(%arg0: i32) -> (i32, i32) {
    %c0_i32 = arith.constant 0 : i32
    %c0_i32_0 = arith.constant 0 : i32
    %c0_i32_1 = arith.constant 0 : i32
    return %c0_i32, %c0_i32_0 : i32, i32
  }
  func.func @transform_4(%arg0: i32) -> (i32, i32) {
    %c0_i32 = arith.constant 0 : i32
    %c0_i32_0 = arith.constant 0 : i32
    %c0_i32_1 = arith.constant 0 : i32
    return %c0_i32, %c0_i32_0 : i32, i32
  }
  func.func @transform_5(%arg0: i32) -> (i32, i32) {
    %c0_i32 = arith.constant 0 : i32
    %c0_i32_0 = arith.constant 0 : i32
    %c0_i32_1 = arith.constant 0 : i32
    return %c0_i32, %c0_i32_0 : i32, i32
  }
  func.func @transform_6(%arg0: i32) -> (i32, i32) {
    %c0_i32 = arith.constant 0 : i32
    %c0_i32_0 = arith.constant 0 : i32
    %c0_i32_1 = arith.constant 0 : i32
    return %c0_i32, %c0_i32_0 : i32, i32
  }
  func.func @transform_7(%arg0: i32) -> (i32, i32) {
    %c0_i32 = arith.constant 0 : i32
    %c0_i32_0 = arith.constant 0 : i32
    %c0_i32_1 = arith.constant 0 : i32
    return %c0_i32, %c0_i32_0 : i32, i32
  }
  func.func @transform_8(%arg0: i32) -> (i32, i32) {
    %c0_i32 = arith.constant 0 : i32
    %c0_i32_0 = arith.constant 0 : i32
    %c0_i32_1 = arith.constant 0 : i32
    return %c0_i32, %c0_i32_0 : i32, i32
  }
  func.func @transform_9(%arg0: i32) -> (i32, i32) {
    %c0_i32 = arith.constant 0 : i32
    %c0_i32_0 = arith.constant 0 : i32
    %c0_i32_1 = arith.constant 0 : i32
    return %c0_i32, %c0_i32_0 : i32, i32
  }
  func.func @transform_10(%arg0: i32) -> (i32, i32) {
    %c0_i32 = arith.constant 0 : i32
    %c0_i32_0 = arith.constant 0 : i32
    %c0_i32_1 = arith.constant 0 : i32
    return %c0_i32, %c0_i32_0 : i32, i32
  }
}

</mosaic_0001>

<bundles_post_ra>
// kernel: eeg_encoder_forward.1
= control target key start
LH: loop header
LB: loop body
LE: loop exit
PB: predicated region body
PF: predicated region fallthrough
CT: control target
= control target key end

     0   :  { %vm520_vm0 = vcmask 1043456   ;;  %vm495_vm1 = vcmask 64512   ;;  %s3999_s0 = inlined_call_operand.vmem [shape: bf16[128,8], index: 0, kind: input, shape index: {}]   ;;  %s4000_s1 = inlined_call_operand.vmem [shape: bf16[8,32], index: 1, kind: input, shape index: {}]   ;;  %s4001_s2 = inlined_call_operand.vmem [shape: bf16[160,64], index: 2, kind: input, shape index: {}]   ;;  %s4002_s3 = inlined_call_operand.vmem [shape: bf16[192,128], index: 3, kind: input, shape index: {}]   ;;  %s4003_s4 = inlined_call_operand.vmem [shape: f32[1,32], index: 4, kind: input, shape index: {}]   ;;  %s4004_s5 = inlined_call_operand.vmem [shape: f32[1,32], index: 5, kind: input, shape index: {}]   ;;  %s4005_s6 = inlined_call_operand.vmem [shape: f32[1,64], index: 6, kind: input, shape index: {}]   ;;  %s4006_s7 = inlined_call_operand.vmem [shape: f32[1,64], index: 7, kind: input, shape index: {}]   ;;  %s4007_s8 = inlined_call_operand.vmem [shape: f32[1,128], index: 8, kind: input, shape index: {}]   ;;  %s4008_s9 = inlined_call_operand.vmem [shape: f32[1,128], index: 9, kind: input, shape index: {}]   ;;  %s4009_s10 = inlined_call_operand.hbm [shape: f32[2,128], index: 10, kind: output, shape index: {}]  }
   0x1   :  { %v454_v0 = vld [vmem:[%s4000_s1] sm:$0xf]  ;;  %v2399_v3 = vld [vmem:[%s3999_s0 + $0x10] sm:$0xff] }
   0x2   :  { %v522_v1 = vsel %vm520_vm0, %v454_v0, 0  ;;  %v2397_v2 = vld [vmem:[%s3999_s0] sm:$0xff]  ;;  %v2403_v5 = vld [vmem:[%s3999_s0 + $0x30] sm:$0xff] }
   0x3   :  { %531 = vmatpush.bf16.msra.mxu0 %v522_v1  ;;  %2427 = vmatpush.bf16.msra.mxu1 %v522_v1  ;;  %v2401_v4 = vld [vmem:[%s3999_s0 + $0x20] sm:$0xff] }
   0x4   :  { %2428 = vmatpush.bf16.msra.mxu2 %v522_v1  ;;  %2429 = vmatpush.bf16.msra.mxu3 %v522_v1 }
   0x5   :  { %15 = vsyncpa [#allocation3], 0  ;;  %v2398_v6 = vld [vmem:[%s3999_s0 + $0x8] sm:$0xff]  ;;  %v2400_v7 = vld [vmem:[%s3999_s0 + $0x18] sm:$0xff]  ;;  %vm573_vm2 = vcmask 261120   ;;  %v2630_v41 = vmov 128.0  }
   0x6   :  { %2285 = vmatmul.msk.bf16.vlgmr.msra.gmra.mxu0 %vm495_vm1, %v2397_v2  ;;  %2287 = vmatmul.msk.bf16.vlgmr.msra.gmra.mxu1 %vm495_vm1, %v2399_v3  ;;  %v2402_v8 = vld [vmem:[%s3999_s0 + $0x28] sm:$0xff]  ;;  %v2404_v9 = vld [vmem:[%s3999_s0 + $0x38] sm:$0xff]  ;;  %2596 = vrcp.f32 %v2630_v41  ;;  %s2634_s17 = smov 32  }
   0x7   :  { %2289 = vmatmul.msk.bf16.vlgmr.msra.gmra.mxu2 %vm495_vm1, %v2401_v4  ;;  %2291 = vmatmul.msk.bf16.vlgmr.msra.gmra.mxu3 %vm495_vm1, %v2403_v5 }
   0xc   :  { %v2597_v48 = vpop.eup %2596 }
   0xd   :  { %v612_v53 = vmul.f32 128.0, %v2597_v48  ;;  %vm616_vm3 = vweird.f32 %v2597_v48 }
   0xf   :  { %v613_v59 = vsub.f32 1.0, %v612_v53 }
  0x11   :  { %v614_v62 = vmul.f32 %v2597_v48, %v613_v59 }
  0x13   :  { %v615_v1 = vadd.f32 %v2597_v48, %v614_v62 }
  0x15   :  { %v2790_v4 = vsel %vm616_vm3, %v2597_v48, %v615_v1 }
  0x16   :  { %2286 = vmatmul.msk.bf16.gmra.mxu0 %vm495_vm1, %v2398_v6  ;;  %2288 = vmatmul.msk.bf16.gmra.mxu1 %vm495_vm1, %v2400_v7 }
  0x17   :  { %2290 = vmatmul.msk.bf16.gmra.mxu2 %vm495_vm1, %v2402_v8  ;;  %2292 = vmatmul.msk.bf16.gmra.mxu3 %vm495_vm1, %v2404_v9 }
  0x83   :  { %v2726_v10 = vpop.f32.mrf.mxu0  ;;  %v2728_v11 = vpop.f32.mrf.mxu1 }
  0x84   :  { %v574_v20 = vsel %vm573_vm2, %v2726_v10, 0.0  ;;  %v581_v28 = vsel %vm573_vm2, %v2728_v11, 0.0 }
  0x8a   :  { %v2732_v13 = vpop.f32.mrf.mxu2  ;;  %v2738_v16 = vpop.f32.mrf.mxu3 }
  0x8b   :  { %v2730_v12 = vpop.f32.mrf.mxu0  ;;  %v2734_v14 = vpop.f32.mrf.mxu1  ;;  %v589_v38 = vsel %vm573_vm2, %v2732_v13, 0.0  ;;  %v597_v50 = vsel %vm573_vm2, %v2738_v16, 0.0 }
  0x8c   :  { %v575_v18 = vsel %vm573_vm2, %v2730_v12, 0.0  ;;  %v583_v31 = vsel %vm573_vm2, %v2734_v14, 0.0 }
  0x8d   :  { %v576_v22 = vadd.f32 %v575_v18, %v574_v20 }
  0x92   :  { %v2740_v17 = vpop.f32.mrf.mxu2  ;;  %v2754_v27 = vpop.f32.mrf.mxu3 }
  0x93   :  { %v2736_v15 = vpop.f32.mrf.mxu0  ;;  %v2744_v19 = vpop.f32.mrf.mxu1  ;;  %v591_v42 = vsel %vm573_vm2, %v2740_v17, 0.0  ;;  %v599_v52 = vsel %vm573_vm2, %v2754_v27, 0.0 }
  0x94   :  { %v577_v21 = vsel %vm573_vm2, %v2736_v15, 0.0  ;;  %v585_v34 = vsel %vm573_vm2, %v2744_v19, 0.0 }
  0x95   :  { %v578_v23 = vadd.f32 %v577_v21, %v576_v22 }
  0x9a   :  { %v2758_v30 = vpop.f32.mrf.mxu2  ;;  %v2770_v40 = vpop.f32.mrf.mxu3 }
  0x9b   :  { %v2750_v24 = vpop.f32.mrf.mxu0  ;;  %v2762_v32 = vpop.f32.mrf.mxu1  ;;  %v593_v45 = vsel %vm573_vm2, %v2758_v30, 0.0  ;;  %v601_v56 = vsel %vm573_vm2, %v2770_v40, 0.0 }
  0x9c   :  { %v579_v25 = vsel %vm573_vm2, %v2750_v24, 0.0  ;;  %v587_v36 = vsel %vm573_vm2, %v2762_v32, 0.0 }
  0x9d   :  { %v580_v26 = vadd.f32 %v579_v25, %v578_v23 }
  0x9f   :  { %v582_v29 = vadd.f32 %v581_v28, %v580_v26 }
  0xa1   :  { %v584_v33 = vadd.f32 %v583_v31, %v582_v29 }
  0xa2   :  { %v2774_v44 = vpop.f32.mrf.mxu2  ;;  %v2784_v55 = vpop.f32.mrf.mxu3 }
  0xa3   :  { %v586_v35 = vadd.f32 %v585_v34, %v584_v33  ;;  %v595_v47 = vsel %vm573_vm2, %v2774_v44, 0.0  ;;  %v603_v58 = vsel %vm573_vm2, %v2784_v55, 0.0 }
  0xa5   :  { %v588_v37 = vadd.f32 %v587_v36, %v586_v35 }
  0xa7   :  { %v590_v39 = vadd.f32 %v589_v38, %v588_v37 }
  0xa9   :  { %v592_v43 = vadd.f32 %v591_v42, %v590_v39 }
  0xab   :  { %v594_v46 = vadd.f32 %v593_v45, %v592_v43 }
  0xad   :  { %v596_v49 = vadd.f32 %v595_v47, %v594_v46 }
  0xaf   :  { %v598_v51 = vadd.f32 %v597_v50, %v596_v49 }
  0xb1   :  { %v600_v54 = vadd.f32 %v599_v52, %v598_v51 }
  0xb3   :  { %v602_v57 = vadd.f32 %v601_v56, %v600_v54 }
  0xb5   :  { %v604_v60 = vadd.f32 %v603_v58, %v602_v57 }
  0xb7   :  { %v605_v61 = vrot.slane %v604_v60, 4 }
  0xb9   :  { %v606_v63 = vadd.f32 %v605_v61, %v604_v60 }
  0xbb   :  { %v607_v0 = vrot.slane %v606_v63, 2 }
  0xbd   :  { %v608_v2 = vadd.f32 %v607_v0, %v606_v63 }
  0xbf   :  { %v609_v3 = vrot.slane %v608_v2, 1 }
  0xc1   :  { %v610_v5 = vadd.f32 %v609_v3, %v608_v2 }
  0xc3   :  { %v2793_v6 = vmul.f32 %v2790_v4, %v610_v5 }
  0xc5   :  { %v619_v7 = vsub.f32 %v2726_v10, %v2793_v6  ;;  %v620_v8 = vsub.f32 %v2730_v12, %v2793_v6  ;;  %v621_v9 = vsub.f32 %v2736_v15, %v2793_v6  ;;  %v622_v18 = vsub.f32 %v2750_v24, %v2793_v6 }
  0xc6   :  { %v623_v22 = vsub.f32 %v2728_v11, %v2793_v6  ;;  %v624_v25 = vsub.f32 %v2734_v14, %v2793_v6  ;;  %v625_v33 = vsub.f32 %v2744_v19, %v2793_v6  ;;  %v626_v37 = vsub.f32 %v2762_v32, %v2793_v6 }
  0xc7   :  { %v635_v20 = vmul.f32 %v619_v7, %v619_v7  ;;  %v636_v21 = vmul.f32 %v620_v8, %v620_v8  ;;  %v637_v23 = vmul.f32 %v621_v9, %v621_v9  ;;  %v638_v26 = vmul.f32 %v622_v18, %v622_v18 }
  0xc8   :  { %v639_v34 = vmul.f32 %v623_v22, %v623_v22  ;;  %v640_v38 = vmul.f32 %v624_v25, %v624_v25  ;;  %v627_v42 = vsub.f32 %v2732_v13, %v2793_v6  ;;  %v641_v43 = vmul.f32 %v625_v33, %v625_v33 }
  0xc9   :  { %v651_v28 = vsel %vm573_vm2, %v635_v20, 0.0  ;;  %v652_v29 = vsel %vm573_vm2, %v636_v21, 0.0  ;;  %v654_v35 = vsel %vm573_vm2, %v637_v23, 0.0  ;;  %v656_v39 = vsel %vm573_vm2, %v638_v26, 0.0 }
  0xca   :  { %v653_v31 = vadd.f32 %v652_v29, %v651_v28  ;;  %v658_v45 = vsel %vm573_vm2, %v639_v34, 0.0  ;;  %v628_v47 = vsub.f32 %v2740_v17, %v2793_v6  ;;  %v642_v48 = vmul.f32 %v626_v37, %v626_v37 }
  0xcb   :  { %v660_v49 = vsel %vm573_vm2, %v640_v38, 0.0  ;;  %v629_v51 = vsub.f32 %v2758_v30, %v2793_v6  ;;  %v643_v52 = vmul.f32 %v627_v42, %v627_v42  ;;  %v662_v53 = vsel %vm573_vm2, %v641_v43, 0.0 }
  0xcc   :  { %v655_v36 = vadd.f32 %v654_v35, %v653_v31  ;;  %v630_v56 = vsub.f32 %v2774_v44, %v2793_v6  ;;  %v644_v57 = vmul.f32 %v628_v47, %v628_v47  ;;  %v664_v58 = vsel %vm573_vm2, %v642_v48, 0.0  ;;  %v2414_v47 = vld [vmem:[%s4001_s2 + $0x48] sm:$0xff]  ;;  %v2413_v48 = vld [vmem:[%s4001_s2 + $0x40] sm:$0xff] }
  0xcd   :  { %v631_v60 = vsub.f32 %v2738_v16, %v2793_v6  ;;  %v645_v61 = vmul.f32 %v629_v51, %v629_v51  ;;  %v666_v62 = vsel %vm573_vm2, %v643_v52, 0.0  ;;  %v632_v0 = vsub.f32 %v2754_v27, %v2793_v6  ;;  %1388 = vmatpush.bf16.msrb.mxu2 %v2414_v47 }
  0xce   :  { %v657_v41 = vadd.f32 %v656_v39, %v655_v36  ;;  %v646_v1 = vmul.f32 %v630_v56, %v630_v56  ;;  %v668_v2 = vsel %vm573_vm2, %v644_v57, 0.0  ;;  %v633_v5 = vsub.f32 %v2770_v40, %v2793_v6  ;;  %v689_v57 = vld [vmem:[%s4003_s4] sm:$0x1]  ;;  %s2632_s4 = smov 64  }
  0xcf   :  { %v647_v7 = vmul.f32 %v631_v60, %v631_v60  ;;  %v670_v8 = vsel %vm573_vm2, %v645_v61, 0.0  ;;  %v634_v18 = vsub.f32 %v2784_v55, %v2793_v6  ;;  %v648_v20 = vmul.f32 %v632_v0, %v632_v0 }
  0xd0   :  { %v659_v46 = vadd.f32 %v658_v45, %v657_v41  ;;  %v672_v21 = vsel %vm573_vm2, %v646_v1, 0.0  ;;  %v649_v23 = vmul.f32 %v633_v5, %v633_v5  ;;  %v37_v52 = vlaneseq }
  0xd1   :  { %v674_v25 = vsel %vm573_vm2, %v647_v7, 0.0  ;;  %v650_v28 = vmul.f32 %v634_v18, %v634_v18  ;;  %v676_v29 = vsel %vm573_vm2, %v648_v20, 0.0  ;;  %1389 = vmatpush.bf16.msrb.mxu2 %v2413_v48  ;;  %v2631_v5 = vmov 0.0  }
  0xd2   :  { %v661_v50 = vadd.f32 %v660_v49, %v659_v46  ;;  %v678_v33 = vsel %vm573_vm2, %v649_v23, 0.0  ;;  %v2850_v56 = vshrl.u32 %v37_v52, 7 }
  0xd3   :  { %v680_v35 = vsel %vm573_vm2, %v650_v28, 0.0 }
  0xd4   :  { %v663_v54 = vadd.f32 %v662_v53, %v661_v50  ;;  %vm889_vm8 = vcmp.lt.s32.totalorder %v2850_v56, 7  ;;  %vm938_vm9 = vcmp.lt.s32.totalorder %v2850_v56, 6  ;;  %vm840_vm10 = vcmp.lt.s32.totalorder %v2850_v56, 1 }
  0xd5   :  { %vm791_vm3 = vcmp.lt.s32.totalorder %v2850_v56, 2 }
  0xd6   :  { %v665_v59 = vadd.f32 %v664_v58, %v663_v54 }
  0xd8   :  { %v667_v63 = vadd.f32 %v666_v62, %v665_v59  ;;  %v58_v59 = vand.u32 63, %v2850_v56  ;;  %v702_v62 = vld [vmem:[%s4004_s5] sm:$0x1]  ;;  %s2633_s5 = smov 96  }
  0xda   :  { %v669_v3 = vadd.f32 %v668_v2, %v667_v63  ;;  %v2860_v63 = vadd.s32 56, %v2850_v56  ;;  %vm294_vm7 = vcmp.ge.s32.totalorder %v58_v59, 1  ;;  %vm3070_vm13 = vcmp.ge.s32.totalorder %v58_v59, 2 }
  0xdb   :  { %v2870_v7 = vsel %vm294_vm7, 1.0, %v2631_v5 }
  0xdc   :  { %v671_v9 = vadd.f32 %v670_v8, %v669_v3  ;;  %v107_v8 = vand.u32 63, %v2860_v63 }
  0xde   :  { %v673_v22 = vadd.f32 %v672_v21, %v671_v9  ;;  %vm2975_vm11 = vcmp.lt.s32.totalorder %v107_v8, 63  ;;  %vm397_vm14 = vcmp.lt.s32.totalorder %v107_v8, 62 }
  0xdf   :  { %v2251_v8 = vsel %vm397_vm14, 1.0, %v2631_v5 }
  0xe0   :  { %v675_v26 = vadd.f32 %v674_v25, %v673_v22 }
  0xe2   :  { %v677_v31 = vadd.f32 %v676_v29, %v675_v26 }
  0xe4   :  { %v679_v34 = vadd.f32 %v678_v33, %v677_v31 }
  0xe6   :  { %v681_v36 = vadd.f32 %v680_v35, %v679_v34 }
  0xe8   :  { %v682_v37 = vrot.slane %v681_v36, 4 }
  0xea   :  { %v683_v38 = vadd.f32 %v682_v37, %v681_v36 }
  0xec   :  { %v684_v39 = vrot.slane %v683_v38, 2 }
  0xee   :  { %v685_v41 = vadd.f32 %v684_v39, %v683_v38 }
  0xf0   :  { %v686_v42 = vrot.slane %v685_v41, 1 }
  0xf2   :  { %v687_v43 = vadd.f32 %v686_v42, %v685_v41 }
  0xf4   :  { %v688_v45 = vmul.f32 %v687_v43, %v2790_v4 }
  0xf6   :  { %v690_v46 = vadd.f32 1e-05, %v688_v45 }
  0xf8   :  { %2598 = vrsqrt.f32 %v690_v46  ;;  %vm697_vm5 = vweird.f32 %v690_v46 }
  0xfe   :  { %v2599_v49 = vpop.eup %2598 }
  0xff   :  { %v692_v50 = vmul.f32 %v2599_v49, %v690_v46  ;;  %vm698_vm4 = vweird.f32 %v2599_v49 }
 0x100   :  { %vm699_vm6 = vmor %vm697_vm5, %vm698_vm4  ;;  %vm1179_vm4 = vcmask 523264   ;;  %vm1196_vm5 = vcmask 785408  }
 0x101   :  { %v693_v51 = vmul.f32 %v2599_v49, %v692_v50 }
 0x103   :  { %v694_v53 = vmul.f32 0.5, %v693_v51 }
 0x105   :  { %v695_v54 = vsub.f32 1.5, %v694_v53 }
 0x107   :  { %v696_v58 = vmul.f32 %v2599_v49, %v695_v54 }
 0x109   :  { %v700_v60 = vsel %vm699_vm6, %v2599_v49, %v696_v58 }
 0x10a   :  { %v701_v61 = vmul.f32 %v700_v60, %v689_v57 }
 0x10c   :  { %v703_v0 = vmul.f32 %v701_v61, %v2793_v6  ;;  %v2863_v1 = vperm.slane %v701_v61, 0 }
 0x10e   :  { %v704_v2 = vsub.f32 %v702_v62, %v703_v0  ;;  %v723_v3 = vmul.f32 %v2863_v1, %v2784_v55  ;;  %v710_v6 = vmul.f32 %v2863_v1, %v2736_v15  ;;  %v711_v18 = vmul.f32 %v2863_v1, %v2750_v24 }
 0x10f   :  { %v708_v20 = vmul.f32 %v2863_v1, %v2726_v10  ;;  %v709_v55 = vmul.f32 %v2863_v1, %v2730_v12  ;;  %v712_v21 = vmul.f32 %v2863_v1, %v2728_v11  ;;  %v713_v15 = vmul.f32 %v2863_v1, %v2734_v14 }
 0x110   :  { %v2873_v9 = vperm.slane %v704_v2, 0  ;;  %v714_v24 = vmul.f32 %v2863_v1, %v2744_v19  ;;  %v715_v35 = vmul.f32 %v2863_v1, %v2762_v32 }
 0x112   :  { %v742_v10 = vadd.f32 %v2873_v9, %v723_v3  ;;  %v729_v22 = vadd.f32 %v2873_v9, %v710_v6  ;;  %v730_v23 = vadd.f32 %v2873_v9, %v711_v18  ;;  %v727_v25 = vadd.f32 %v2873_v9, %v708_v20 }
 0x113   :  { %v728_v12 = vadd.f32 %v2873_v9, %v709_v55  ;;  %v731_v26 = vadd.f32 %v2873_v9, %v712_v21  ;;  %v732_v11 = vadd.f32 %v2873_v9, %v713_v15  ;;  %v733_v28 = vadd.f32 %v2873_v9, %v714_v24 }
 0x114   :  { %v758_v14 = vmul.f32 0.01, %v742_v10  ;;  %v745_v29 = vmul.f32 0.01, %v729_v22  ;;  %v746_v31 = vmul.f32 0.01, %v730_v23  ;;  %v716_v18 = vmul.f32 %v2863_v1, %v2732_v13 }
 0x115   :  { %v743_v19 = vmul.f32 0.01, %v727_v25  ;;  %v744_v33 = vmul.f32 0.01, %v728_v12  ;;  %v747_v34 = vmul.f32 0.01, %v731_v26 }
 0x116   :  { %v2902_v36 = vmax.f32 %v742_v10, %v758_v14  ;;  %v2904_v37 = vmax.f32 %v729_v22, %v745_v29  ;;  %v2906_v38 = vmax.f32 %v730_v23, %v746_v31  ;;  %v748_v39 = vmul.f32 0.01, %v732_v11 }
 0x117   :  { %v2908_v41 = vmax.f32 %v727_v25, %v743_v19  ;;  %v2910_v42 = vmax.f32 %v728_v12, %v744_v33  ;;  %v2912_v43 = vmax.f32 %v731_v26, %v747_v34  ;;  %v749_v45 = vmul.f32 0.01, %v733_v28 }
 0x118   :  { %v2456_v46 = vpack.i.bf16 %v2906_v38, %v2904_v37  ;;  %v924_v47 = vrot.slane %v2904_v37, 2  ;;  %v875_v32 = vrot.slane %v2904_v37, 1  ;;  %v839_v48 = vrot.slane %v2902_v36, 7 }
 0x119   :  { %v922_v49 = vrot.slane %v2908_v41, 2  ;;  %v923_v50 = vrot.slane %v2910_v42, 2  ;;  %v873_v51 = vrot.slane %v2908_v41, 1  ;;  %v874_v52 = vrot.slane %v2910_v42, 1 }
 0x11a   :  { %2457 = vrot.lane.b32.xlu2 %v2456_v46, %s2632_s4  ;;  %v824_v53 = vrot.slane %v2908_v41, 7  ;;  %v825_v54 = vrot.slane %v2910_v42, 7  ;;  %v876_v57 = vrot.slane %v2906_v38, 1  ;;  %v877_v58 = vrot.slane %v2912_v43, 1 }
 0x11b   :  { %v952_v60 = vsel %vm938_vm9, %v923_v50, %v924_v47  ;;  %v953_v61 = vsel %vm938_vm9, %v922_v49, %v923_v50  ;;  %v903_v62 = vsel %vm889_vm8, %v874_v52, %v875_v32  ;;  %v904_v0 = vsel %vm889_vm8, %v873_v51, %v874_v52 }
 0x11c   :  { %v1214_v2 = vpack.c.bf16 %v952_v60, %v953_v61  ;;  %v2446_v3 = vpack.i.bf16 %v903_v62, %v904_v0  ;;  %v856_v6 = vsel %vm840_vm10, %v839_v48, %v824_v53  ;;  %v901_v55 = vsel %vm889_vm8, %v876_v57, %v877_v58 }
 0x11d   :  { %v857_v20 = vmul.f32 %v2870_v7, %v856_v6  ;;  %v902_v21 = vsel %vm889_vm8, %v875_v32, %v876_v57  ;;  %v826_v15 = vrot.slane %v2904_v37, 7  ;;  %v855_v24 = vsel %vm840_vm10, %v824_v53, %v825_v54 }
 0x11e   :  { %2333 = vmatmul.msk.bf16.vlgmr.msrb.gmra.mxu2 %vm573_vm2, %v1214_v2  ;;  %2447 = vrot.lane.b32.xlu1 %v2446_v3, %s2633_s5  ;;  %v827_v13 = vrot.slane %v2906_v38, 7  ;;  %v2959_v10 = vmax.f32 %v732_v11, %v748_v39  ;;  %v734_v22 = vadd.f32 %v2873_v9, %v715_v35  ;;  %v2962_v25 = vmax.f32 %v733_v28, %v749_v45 }
 0x11f   :  { %v2436_v23 = vpack.i.bf16 %v855_v24, %v857_v20  ;;  %v735_v12 = vadd.f32 %v2873_v9, %v716_v18  ;;  %v2461_v26 = vpack.i.bf16 %v901_v55, %v902_v21  ;;  %v854_v11 = vsel %vm840_vm10, %v825_v54, %v826_v15 }
 0x120   :  { %v878_v14 = vrot.slane %v2959_v10, 1  ;;  %v853_v29 = vsel %vm840_vm10, %v826_v15, %v827_v13  ;;  %v879_v31 = vrot.slane %v2962_v25, 1  ;;  %v750_v19 = vmul.f32 0.01, %v734_v22 }
 0x121   :  { %2437 = vrot.lane.b32.xlu0 %v2436_v23, %s2634_s17  ;;  %v2980_v33 = vadd.s32 64, %v2850_v56  ;;  %v925_v34 = vrot.slane %v2906_v38, 2  ;;  %v751_v35 = vmul.f32 0.01, %v735_v12  ;;  %v717_v39 = vmul.f32 %v2863_v1, %v2740_v17 }
 0x122   :  { %2462 = vrot.lane.b32.xlu2 %v2461_v26, %s2633_s5  ;;  %v718_v45 = vmul.f32 %v2863_v1, %v2758_v30  ;;  %v2451_v46 = vpack.i.bf16 %v853_v29, %v854_v11  ;;  %v900_v32 = vsel %vm889_vm8, %v877_v58, %v878_v14  ;;  %v926_v50 = vrot.slane %v2912_v43, 2 }
 0x123   :  { %v2990_v52 = vmax.f32 %v734_v22, %v750_v19  ;;  %v899_v53 = vsel %vm889_vm8, %v878_v14, %v879_v31  ;;  %v2994_v54 = vmax.f32 %v735_v12, %v751_v35  ;;  %v736_v57 = vadd.f32 %v2873_v9, %v717_v39 }
 0x124   :  { %v737_v17 = vadd.f32 %v2873_v9, %v718_v45  ;;  %v2441_v58 = vpack.i.bf16 %v2910_v42, %v2908_v41  ;;  %v828_v60 = vrot.slane %v2912_v43, 7  ;;  %v829_v61 = vrot.slane %v2959_v10, 7 }
 0x125   :  { %v880_v30 = vrot.slane %v2990_v52, 1  ;;  %v881_v62 = vrot.slane %v2994_v54, 1  ;;  %v2476_v0 = vpack.i.bf16 %v899_v53, %v900_v32  ;;  %v951_v2 = vsel %vm938_vm9, %v924_v47, %v925_v34 }
 0x126   :  { %2452 = vrot.lane.b32.xlu1 %v2451_v46, %s2634_s17  ;;  %v3012_v3 = vsel %vm2975_vm11, 1.0, %v2631_v5  ;;  %v114_v6 = vand.u32 63, %v2980_v33  ;;  %v950_v18 = vsel %vm938_vm9, %v925_v34, %v926_v50  ;;  %v752_v55 = vmul.f32 0.01, %v736_v57 }
 0x127   :  { %v897_v20 = vsel %vm889_vm8, %v880_v30, %v881_v62  ;;  %v753_v21 = vmul.f32 0.01, %v737_v17  ;;  %v830_v47 = vrot.slane %v2962_v25, 7  ;;  %v719_v15 = vmul.f32 %v2863_v1, %v2774_v44 }
 0x128   :  { %v851_v24 = vsel %vm840_vm10, %v828_v60, %v829_v61  ;;  %v852_v22 = vsel %vm840_vm10, %v827_v13, %v828_v60  ;;  %v831_v23 = vrot.slane %v2990_v52, 7  ;;  %v720_v12 = vmul.f32 %v2863_v1, %v2738_v16 }
 0x129   :  { %2442 = vrot.lane.b32.xlu0 %v2441_v58, %s2632_s4  ;;  %v1216_v26 = vpack.c.bf16 %v950_v18, %v951_v2  ;;  %v2471_v14 = vpack.i.bf16 %v2959_v10, %v2912_v43  ;;  %v913_v29 = vmul.f32 %v3012_v3, %v897_v20  ;;  %v738_v11 = vadd.f32 %v2873_v9, %v719_v15 }
 0x12a   :  { %2477 = vrot.lane.b32.xlu2 %v2476_v0, %s2633_s5  ;;  %v3037_v44 = vmax.f32 %v736_v57, %v752_v55  ;;  %v3039_v28 = vmax.f32 %v737_v17, %v753_v21  ;;  %vm3043_vm12 = vcmp.ge.s32.totalorder %v114_v6, 1  ;;  %v739_v16 = vadd.f32 %v2873_v9, %v720_v12 }
 0x12b   :  { %v2466_v19 = vpack.i.bf16 %v851_v24, %v852_v22  ;;  %v850_v34 = vsel %vm840_vm10, %v829_v61, %v830_v47  ;;  %v927_v35 = vrot.slane %v2959_v10, 2  ;;  %v721_v39 = vmul.f32 %v2863_v1, %v2754_v27 }
 0x12c   :  { %v898_v45 = vsel %vm889_vm8, %v879_v31, %v880_v30  ;;  %v849_v46 = vsel %vm840_vm10, %v830_v47, %v831_v23  ;;  %v754_v32 = vmul.f32 0.01, %v738_v11  ;;  %v722_v53 = vmul.f32 %v2863_v1, %v2770_v40 }
 0x12d   :  { %v2491_v57 = vpack.i.bf16 %v913_v29, %v898_v45  ;;  %v928_v17 = vrot.slane %v2962_v25, 2  ;;  %v755_v58 = vmul.f32 0.01, %v739_v16  ;;  %v740_v60 = vadd.f32 %v2873_v9, %v721_v39 }
 0x12e   :  { %2334 = vmatmul.msk.bf16.gmra.mxu2 %vm573_vm2, %v1216_v26  ;;  %2472 = vrot.lane.b32.xlu1 %v2471_v14, %s2632_s4  ;;  %v882_v27 = vrot.slane %v3037_v44, 1  ;;  %v883_v61 = vrot.slane %v3039_v28, 1  ;;  %v832_v31 = vrot.slane %v2994_v54, 7  ;;  %v741_v30 = vadd.f32 %v2873_v9, %v722_v53 }
 0x12f   :  { %v3078_v1 = vsel %vm3043_vm12, 1.0, %v2631_v5  ;;  %v756_v0 = vmul.f32 0.01, %v740_v60  ;;  %v2486_v2 = vpack.i.bf16 %v2990_v52, %v2962_v25  ;;  %v2481_v18 = vpack.i.bf16 %v849_v46, %v850_v34 }
 0x130   :  { %v3082_v20 = vmax.f32 %v738_v11, %v754_v32  ;;  %v757_v9 = vmul.f32 0.01, %v741_v30  ;;  %v948_v59 = vsel %vm938_vm9, %v927_v35, %v928_v17  ;;  %v949_v55 = vsel %vm938_vm9, %v926_v50, %v927_v35 }
 0x131   :  { %2467 = vrot.lane.b32.xlu0 %v2466_v19, %s2634_s17  ;;  %v3092_v21 = vmax.f32 %v739_v16, %v755_v58  ;;  %v3094_v47 = vmax.f32 %v740_v60, %v756_v0  ;;  %v895_v15 = vsel %vm889_vm8, %v882_v27, %v883_v61  ;;  %v896_v24 = vsel %vm889_vm8, %v881_v62, %v882_v27 }
 0x132   :  { %2492 = vrot.lane.b32.xlu2 %v2491_v57, %s2633_s5  ;;  %v848_v22 = vsel %vm840_vm10, %v831_v23, %v832_v31  ;;  %v3102_v12 = vmax.f32 %v741_v30, %v757_v9  ;;  %v833_v26 = vrot.slane %v3037_v44, 7  ;;  %v834_v50 = vrot.slane %v3039_v28, 7 }
 0x133   :  { %v929_v14 = vrot.slane %v2990_v52, 2  ;;  %v930_v29 = vrot.slane %v2994_v54, 2  ;;  %v884_v11 = vrot.slane %v3082_v20, 1  ;;  %v835_v13 = vrot.slane %v3082_v20, 7 }
 0x134   :  { %v53_v62 = vadd.s32 120, %v2850_v56  ;;  %v2506_v23 = vpack.i.bf16 %v895_v15, %v896_v24  ;;  %v885_v16 = vrot.slane %v3092_v21, 1  ;;  %v886_v19 = vrot.slane %v3094_v47, 1  ;;  %v2416_v56 = vld [vmem:[%s4002_s3 + $0x8] sm:$0xff] }
 0x135   :  { %v887_v34 = vrot.slane %v3102_v12, 1  ;;  %v2245_v35 = vsel %vm3070_vm13, 1.0, %v2631_v5  ;;  %v1218_v39 = vpack.c.bf16 %v948_v59, %v949_v55  ;;  %v865_v45 = vmul.f32 %v3078_v1, %v848_v22 }
 0x136   :  { %2487 = vrot.lane.b32.xlu1 %v2486_v2, %s2632_s4  ;;  %v2501_v63 = vpack.i.bf16 %v3037_v44, %v2994_v54  ;;  %v946_v46 = vsel %vm938_vm9, %v929_v14, %v930_v29  ;;  %v163_v32 = vand.u32 63, %v53_v62  ;;  %v847_v53 = vsel %vm840_vm10, %v832_v31, %v833_v26 }
 0x137   :  { %v894_v57 = vsel %vm889_vm8, %v883_v61, %v884_v11  ;;  %v845_v58 = vsel %vm840_vm10, %v834_v50, %v835_v13  ;;  %v846_v60 = vsel %vm840_vm10, %v833_v26, %v834_v50  ;;  %v893_v27 = vsel %vm889_vm8, %v884_v11, %v885_v16 }
 0x138   :  { %v891_v30 = vsel %vm889_vm8, %v886_v19, %v887_v34  ;;  %v892_v31 = vsel %vm889_vm8, %v885_v16, %v886_v19  ;;  %v888_v61 = vrot.slane %v2902_v36, 1  ;;  %v2496_v40 = vpack.i.bf16 %v847_v53, %v865_v45 }
 0x139   :  { %2482 = vrot.lane.b32.xlu0 %v2481_v18, %s2634_s17  ;;  %vm3153_vm15 = vcmp.ge.s32.totalorder %v114_v6, 2  ;;  %v2516_v2 = vpack.i.bf16 %v3082_v20, %v3039_v28  ;;  %v3159_v18 = vmul.f32 %v2251_v8, %v946_v46  ;;  %v2511_v9 = vpack.i.bf16 %v845_v58, %v846_v60 }
 0x13a   :  { %2507 = vrot.lane.b32.xlu2 %v2506_v23, %s2633_s5  ;;  %vm357_vm0 = vcmp.lt.s32.totalorder %v163_v32, 63  ;;  %v936_v59 = vrot.slane %v3102_v12, 2  ;;  %vm405_vm1 = vcmp.lt.s32.totalorder %v163_v32, 62  ;;  %v2521_v55 = vpack.i.bf16 %v893_v27, %v894_v57 }
 0x13b   :  { %v2536_v33 = vpack.i.bf16 %v891_v30, %v892_v31  ;;  %v836_v6 = vrot.slane %v3092_v21, 7  ;;  %v837_v15 = vrot.slane %v3094_v47, 7  ;;  %v905_v24 = vsel %vm889_vm8, %v888_v61, %v873_v51 }
 0x13c   :  { %v2252_v22 = vsel %vm405_vm1, 1.0, %v2631_v5  ;;  %v937_v26 = vrot.slane %v2902_v36, 2  ;;  %v775_v50 = vrot.slane %v2908_v41, 6  ;;  %v3177_v11 = vsel %vm357_vm0, 1.0, %v2631_v5 }
 0x13d   :  { %v776_v62 = vrot.slane %v2910_v42, 6  ;;  %v790_v23 = vrot.slane %v2902_v36, 6  ;;  %v777_v19 = vrot.slane %v2904_v37, 6  ;;  %v778_v42 = vrot.slane %v2906_v38, 6 }
 0x13e   :  { %2335 = vmatmul.msk.bf16.gmra.mxu2 %vm573_vm2, %v1218_v39  ;;  %2502 = vrot.lane.b32.xlu1 %v2501_v63, %s2632_s4  ;;  %v3187_v51 = vsel %vm938_vm9, %v936_v59, %v937_v26  ;;  %v954_v16 = vsel %vm938_vm9, %v937_v26, %v922_v49  ;;  %v779_v8 = vrot.slane %v2912_v43, 6  ;;  %v780_v38 = vrot.slane %v2959_v10, 6 }
 0x13f   :  { %v3195_v39 = vmul.f32 %v2252_v22, %v954_v16  ;;  %v3199_v45 = vsel %vm791_vm3, %v775_v50, %v776_v62  ;;  %v807_v63 = vsel %vm791_vm3, %v790_v23, %v775_v50  ;;  %v3208_v41 = vsel %vm791_vm3, %v777_v19, %v778_v42 }
 0x140   :  { %v3204_v46 = vmul.f32 %v2245_v35, %v807_v63  ;;  %v3212_v37 = vsel %vm791_vm3, %v776_v62, %v777_v19  ;;  %v3219_v32 = vsel %vm791_vm3, %v778_v42, %v779_v8  ;;  %v781_v43 = vrot.slane %v2962_v25, 6 }
 0x141   :  { %2497 = vrot.lane.b32.xlu0 %v2496_v40, %s2634_s17  ;;  %v1228_v49 = vpack.c.bf16 %v3195_v39, %v3187_v51  ;;  %v782_v35 = vrot.slane %v2990_v52, 6  ;;  %v3226_v53 = vsel %vm791_vm3, %v779_v8, %v780_v38  ;;  %v783_v57 = vrot.slane %v2994_v54, 6 }
 0x142   :  { %2522 = vrot.lane.b32.xlu2 %v2521_v55, %s2633_s5  ;;  %v784_v10 = vrot.slane %v3037_v44, 6  ;;  %v2246_v58 = vsel %vm3153_vm15, 1.0, %v2631_v5  ;;  %v3239_v27 = vsel %vm791_vm3, %v780_v38, %v781_v43  ;;  %v785_v30 = vrot.slane %v3039_v28, 6 }
 0x143   :  { %v3235_v60 = vsel %vm791_vm3, %v781_v43, %v782_v35  ;;  %v786_v31 = vrot.slane %v3082_v20, 6  ;;  %v799_v0 = vsel %vm791_vm3, %v782_v35, %v783_v57  ;;  %v787_v5 = vrot.slane %v3092_v21, 6  ;;  %v2409_v35 = vld [vmem:[%s4001_s2 + $0x20] sm:$0xff] }
 0x144   :  { %v3245_v40 = vsel %vm791_vm3, %v783_v57, %v784_v10  ;;  %v3252_v55 = vmul.f32 %v2246_v58, %v799_v0  ;;  %v3260_v26 = vsel %vm791_vm3, %v784_v10, %v785_v30  ;;  %v789_v50 = vrot.slane %v3102_v12, 6 }
 0x145   :  { %v3256_v22 = vsel %vm791_vm3, %v785_v30, %v786_v31  ;;  %v2531_v16 = vpack.i.bf16 %v3094_v47, %v3092_v21  ;;  %v947_v19 = vsel %vm938_vm9, %v928_v17, %v929_v14  ;;  %v843_v52 = vsel %vm840_vm10, %v836_v6, %v837_v15  ;;  %v2407_v30 = vld [vmem:[%s4001_s2 + $0x10] sm:$0xff] }
 0x146   :  { %2517 = vrot.lane.b32.xlu1 %v2516_v2, %s2632_s4  ;;  %v788_v2 = vrot.slane %v3094_v47, 6  ;;  %v1220_v63 = vpack.c.bf16 %v3159_v18, %v947_v19  ;;  %v844_v25 = vsel %vm840_vm10, %v835_v13, %v836_v6  ;;  %v921_v17 = vmul.f32 %v3177_v11, %v905_v24 }
 0x147   :  { %v2526_v14 = vpack.i.bf16 %v843_v52, %v844_v25  ;;  %v890_v18 = vsel %vm889_vm8, %v887_v34, %v888_v61  ;;  %v838_v8 = vrot.slane %v3102_v12, 7  ;;  %v2546_v13 = vpack.i.bf16 %v2902_v36, %v3102_v12 }
 0x148   :  { %v3266_v62 = vsel %vm791_vm3, %v787_v5, %v788_v2  ;;  %v3286_v42 = vsel %vm791_vm3, %v788_v2, %v789_v50  ;;  %v931_v61 = vrot.slane %v3037_v44, 2  ;;  %v932_v24 = vrot.slane %v3039_v28, 2  ;;  %v2412_v44 = vld [vmem:[%s4001_s2 + $0x38] sm:$0xff]  ;;  %v2411_v28 = vld [vmem:[%s4001_s2 + $0x30] sm:$0xff] }
 0x149   :  { %2512 = vrot.lane.b32.xlu0 %v2511_v9, %s2634_s17  ;;  %v3270_v9 = vsel %vm791_vm3, %v786_v31, %v787_v5  ;;  %v841_v6 = vsel %vm840_vm10, %v838_v8, %v839_v48  ;;  %v842_v34 = vsel %vm840_vm10, %v837_v15, %v838_v8  ;;  %1333 = vmatpush.bf16.msrb.mxu1 %v2412_v44  ;;  %v933_v15 = vrot.slane %v3082_v20, 2  ;;  %v2408_v20 = vld [vmem:[%s4001_s2 + $0x18] sm:$0xff]  ;;  %v2406_v5 = vld [vmem:[%s4001_s2 + $0x8] sm:$0xff] }
 0x14a   :  { %2537 = vrot.lane.b32.xlu2 %v2536_v33, %s2633_s5  ;;  %v3282_v33 = vsel %vm791_vm3, %v789_v50, %v790_v23  ;;  %v2551_v23 = vpack.i.bf16 %v921_v17, %v890_v18  ;;  %v2541_v38 = vpack.i.bf16 %v841_v6, %v842_v34  ;;  %v944_v36 = vsel %vm938_vm9, %v931_v61, %v932_v24 }
 0x14b   :  { %v945_v48 = vsel %vm938_vm9, %v930_v29, %v931_v61  ;;  %v934_v54 = vrot.slane %v3092_v21, 2  ;;  %v2410_v29 = vld [vmem:[%s4001_s2 + $0x28] sm:$0xff]  ;;  %v943_v10 = vsel %vm938_vm9, %v932_v24, %v933_v15  ;;  %v935_v21 = vrot.slane %v3094_v47, 2  ;;  %v2405_v47 = vld [vmem:[%s4001_s2] sm:$0xff] }
 0x14c   :  { %v1222_v43 = vpack.c.bf16 %v944_v36, %v945_v48  ;;  %vm2225_vm11 = vcmask 1041409  }
 0x14d   :  { %1334 = vmatpush.bf16.msrb.mxu1 %v2411_v28  ;;  %v942_v57 = vsel %vm938_vm9, %v933_v15, %v934_v54  ;;  %v940_v31 = vsel %vm938_vm9, %v935_v21, %v936_v59  ;;  %v941_v0 = vsel %vm938_vm9, %v934_v54, %v935_v21 }
 0x14e   :  { %2532 = vrot.lane.b32.xlu1 %v2531_v16, %s2632_s4  ;;  %2336 = vmatmul.msk.bf16.gmra.mxu2 %vm573_vm2, %v1220_v63  ;;  %v1224_v58 = vpack.c.bf16 %v942_v57, %v943_v10  ;;  %v1226_v2 = vpack.c.bf16 %v940_v31, %v941_v0 }
 0x151   :  { %2527 = vrot.lane.b32.xlu0 %v2526_v14, %s2634_s17  ;;  %1335 = vmatpush.bf16.msrb.mxu1 %v2410_v29 }
 0x152   :  { %2552 = vrot.lane.b32.xlu2 %v2551_v23, %s2633_s5  ;;  %s2236_s5 = sshll.u32 %s4009_s10, 4  ;;  %s2237_s5 = int_to_ptr.hbm [resolvable:$true] %s2236_s5 }
 0x155   :  { %1336 = vmatpush.bf16.msrb.mxu1 %v2409_v35 }
 0x156   :  { %2547 = vrot.lane.b32.xlu1 %v2546_v13, %s2632_s4 }
 0x159   :  { %2542 = vrot.lane.b32.xlu0 %v2541_v38, %s2634_s17  ;;  %1337 = vmatpush.bf16.msrb.mxu1 %v2408_v20 }
 0x15d   :  { %1338 = vmatpush.bf16.msrb.mxu1 %v2407_v30 }
 0x15e   :  { %2337 = vmatmul.msk.bf16.gmra.mxu2 %vm573_vm2, %v1222_v43 }
 0x161   :  { %1339 = vmatpush.bf16.msrb.mxu1 %v2406_v5 }
 0x165   :  { %1340 = vmatpush.bf16.msrb.mxu1 %v2405_v47 }
 0x16e   :  { %2338 = vmatmul.msk.bf16.gmra.mxu2 %vm573_vm2, %v1224_v58 }
 0x174   :  { %v2458_v12 = vpop.permute.xlu2 %2457 }
 0x175   :  { %v2460_v19 = vunpack.i.h.bf16 %v2458_v12  ;;  %v2459_v18 = vunpack.i.l.bf16 %v2458_v12 }
 0x17c   :  { %v2463_v16 = vpop.permute.xlu2 %2462 }
 0x17d   :  { %v2465_v23 = vunpack.i.h.bf16 %v2463_v16  ;;  %v2464_v8 = vunpack.i.l.bf16 %v2463_v16 }
 0x17e   :  { %2339 = vmatmul.msk.bf16.gmra.mxu2 %vm573_vm2, %v1226_v2 }
 0x184   :  { %v2478_v57 = vpop.permute.xlu2 %2477 }
 0x185   :  { %v2480_v21 = vunpack.i.h.bf16 %v2478_v57  ;;  %v2479_v30 = vunpack.i.l.bf16 %v2478_v57 }
 0x18c   :  { %v2493_v16 = vpop.permute.xlu2 %2492 }
 0x18e   :  { %2340 = vmatmul.msk.bf16.gmra.mxu2 %vm573_vm2, %v1228_v49 }
 0x190   :  { %v2448_v59 = vpop.permute.xlu1 %2447 }
 0x191   :  { %v2450_v13 = vunpack.i.h.bf16 %v2448_v59  ;;  %v2449_v6 = vunpack.i.l.bf16 %v2448_v59 }
 0x193   :  { %v2438_v50 = vpop.permute.xlu0 %2437 }
 0x194   :  { %v2440_v52 = vunpack.i.h.bf16 %v2438_v50  ;;  %v2439_v25 = vunpack.i.l.bf16 %v2438_v50 }
 0x196   :  { %v1164_v36 = vsel %vm573_vm2, %v3199_v45, %v2440_v52  ;;  %v1163_v48 = vsel %vm573_vm2, %v3204_v46, %v2439_v25 }
 0x198   :  { %v2453_v63 = vpop.permute.xlu1 %2452 }
 0x199   :  { %v2455_v17 = vunpack.i.h.bf16 %v2453_v63  ;;  %v2454_v14 = vunpack.i.l.bf16 %v2453_v63 }
 0x19b   :  { %v1165_v51 = vsel %vm573_vm2, %v3212_v37, %v2454_v14  ;;  %v1166_v39 = vsel %vm573_vm2, %v3208_v41, %v2455_v17  ;;  %v2443_v49 = vpop.permute.xlu0 %2442  ;;  %v2494_v14 = vunpack.i.l.bf16 %v2493_v16 }
 0x19c   :  { %v2445_v34 = vunpack.i.h.bf16 %v2443_v49  ;;  %v2444_v61 = vunpack.i.l.bf16 %v2443_v49  ;;  %v1182_v24 = vsel %vm1179_vm4, %v1165_v51, %v2459_v18  ;;  %v1183_v38 = vsel %vm1179_vm4, %v1166_v39, %v2460_v19 }
 0x19d   :  { %v1199_v43 = vsel %vm1196_vm5, %v1182_v24, %v2464_v8  ;;  %v1200_v37 = vsel %vm1196_vm5, %v1183_v38, %v2465_v23  ;;  %v2508_v24 = vpop.permute.xlu2 %2507 }
 0x19e   :  { %v1180_v44 = vsel %vm1179_vm4, %v1163_v48, %v2444_v61  ;;  %v1181_v41 = vsel %vm1179_vm4, %v1164_v36, %v2445_v34  ;;  %v1215_v28 = vpack.c.bf16 %v1200_v37, %v1199_v43  ;;  %v2510_v48 = vunpack.i.h.bf16 %v2508_v24 }
 0x19f   :  { %v1197_v15 = vsel %vm1196_vm5, %v1180_v44, %v2449_v6  ;;  %v1198_v54 = vsel %vm1196_vm5, %v1181_v41, %v2450_v13  ;;  %v2509_v43 = vunpack.i.l.bf16 %v2508_v24 }
 0x1a0   :  { %v2473_v29 = vpop.permute.xlu1 %2472  ;;  %v1213_v35 = vpack.c.bf16 %v1198_v54, %v1197_v15 }
 0x1a1   :  { %v2475_v58 = vunpack.i.h.bf16 %v2473_v29  ;;  %v2474_v20 = vunpack.i.l.bf16 %v2473_v29 }
 0x1a2   :  { %1341 = vmatmul.bf16.vlgmr.msrb.gmra.mxu1 %v1213_v35 }
 0x1a3   :  { %v2468_v45 = vpop.permute.xlu0 %2467 }
 0x1a4   :  { %v2470_v10 = vunpack.i.h.bf16 %v2468_v45  ;;  %v2469_v46 = vunpack.i.l.bf16 %v2468_v45 }
 0x1a5   :  { %v2523_v57 = vpop.permute.xlu2 %2522 }
 0x1a6   :  { %v1168_v31 = vsel %vm573_vm2, %v3226_v53, %v2470_v10  ;;  %v1167_v0 = vsel %vm573_vm2, %v3219_v32, %v2469_v46  ;;  %v2495_v53 = vunpack.i.h.bf16 %v2493_v16 }
 0x1a7   :  { %v1184_v5 = vsel %vm1179_vm4, %v1167_v0, %v2474_v20  ;;  %v1185_v2 = vsel %vm1179_vm4, %v1168_v31, %v2475_v58  ;;  %v2525_v58 = vunpack.i.h.bf16 %v2523_v57  ;;  %v2524_v20 = vunpack.i.l.bf16 %v2523_v57 }
 0x1a8   :  { %v1201_v47 = vsel %vm1196_vm5, %v1184_v5, %v2479_v30  ;;  %v1202_v12 = vsel %vm1196_vm5, %v1185_v2, %v2480_v21  ;;  %v2488_v50 = vpop.permute.xlu1 %2487 }
 0x1a9   :  { %v1217_v59 = vpack.c.bf16 %v1202_v12, %v1201_v47  ;;  %v2490_v25 = vunpack.i.h.bf16 %v2488_v50  ;;  %v2489_v17 = vunpack.i.l.bf16 %v2488_v50 }
 0x1ab   :  { %v2483_v19 = vpop.permute.xlu0 %2482 }
 0x1ac   :  { %v2485_v63 = vunpack.i.h.bf16 %v2483_v19  ;;  %v2484_v52 = vunpack.i.l.bf16 %v2483_v19 }
 0x1ae   :  { %v1170_v32 = vsel %vm573_vm2, %v3235_v60, %v2485_v63  ;;  %v1169_v18 = vsel %vm573_vm2, %v3239_v27, %v2484_v52 }
 0x1af   :  { %v1186_v23 = vsel %vm1179_vm4, %v1169_v18, %v2489_v17  ;;  %v1187_v8 = vsel %vm1179_vm4, %v1170_v32, %v2490_v25 }
 0x1b0   :  { %v1203_v13 = vsel %vm1196_vm5, %v1186_v23, %v2494_v14  ;;  %v1204_v6 = vsel %vm1196_vm5, %v1187_v8, %v2495_v53  ;;  %v2503_v49 = vpop.permute.xlu1 %2502 }
 0x1b1   :  { %v1219_v51 = vpack.c.bf16 %v1204_v6, %v1203_v13  ;;  %v2505_v38 = vunpack.i.h.bf16 %v2503_v49  ;;  %v2504_v36 = vunpack.i.l.bf16 %v2503_v49 }
 0x1b2   :  { %1346 = vmatmul.bf16.gmra.mxu1 %v1215_v28 }
 0x1b3   :  { %v2498_v39 = vpop.permute.xlu0 %2497 }
 0x1b4   :  { %v2500_v34 = vunpack.i.h.bf16 %v2498_v39  ;;  %v2499_v61 = vunpack.i.l.bf16 %v2498_v39 }
 0x1b6   :  { %v1172_v60 = vsel %vm573_vm2, %v3245_v40, %v2500_v34  ;;  %v1171_v27 = vsel %vm573_vm2, %v3252_v55, %v2499_v61 }
 0x1b7   :  { %v1188_v37 = vsel %vm1179_vm4, %v1171_v27, %v2504_v36  ;;  %v1189_v44 = vsel %vm1179_vm4, %v1172_v60, %v2505_v38  ;;  %v1391_v36 = vpop.f32.mrf.mxu2 }
 0x1b8   :  { %v1205_v41 = vsel %vm1196_vm5, %v1188_v37, %v2509_v43  ;;  %v1206_v28 = vsel %vm1196_vm5, %v1189_v44, %v2510_v48  ;;  %v2518_v40 = vpop.permute.xlu1 %2517 }
 0x1b9   :  { %v1221_v15 = vpack.c.bf16 %v1206_v28, %v1205_v41  ;;  %v2520_v10 = vunpack.i.h.bf16 %v2518_v40  ;;  %v2519_v46 = vunpack.i.l.bf16 %v2518_v40 }
 0x1bb   :  { %v2513_v54 = vpop.permute.xlu0 %2512 }
 0x1bc   :  { %v2515_v29 = vunpack.i.h.bf16 %v2513_v54  ;;  %v2514_v35 = vunpack.i.l.bf16 %v2513_v54 }
 0x1be   :  { %v1174_v55 = vsel %vm573_vm2, %v3256_v22, %v2515_v29  ;;  %v1173_v45 = vsel %vm573_vm2, %v3260_v26, %v2514_v35 }
 0x1bf   :  { %v1190_v21 = vsel %vm1179_vm4, %v1173_v45, %v2519_v46  ;;  %v1191_v30 = vsel %vm1179_vm4, %v1174_v55, %v2520_v10 }
 0x1c0   :  { %v1207_v0 = vsel %vm1196_vm5, %v1190_v21, %v2524_v20  ;;  %v1208_v5 = vsel %vm1196_vm5, %v1191_v30, %v2525_v58  ;;  %v2533_v47 = vpop.permute.xlu1 %2532 }
 0x1c1   :  { %v1223_v2 = vpack.c.bf16 %v1208_v5, %v1207_v0  ;;  %v2535_v16 = vunpack.i.h.bf16 %v2533_v47  ;;  %v2534_v19 = vunpack.i.l.bf16 %v2533_v47 }
 0x1c2   :  { %1351 = vmatmul.bf16.gmra.mxu1 %v1217_v59  ;;  %v2538_v59 = vpop.permute.xlu2 %2537 }
 0x1c3   :  { %v2528_v31 = vpop.permute.xlu0 %2527  ;;  %v2540_v52 = vunpack.i.h.bf16 %v2538_v59  ;;  %v2539_v25 = vunpack.i.l.bf16 %v2538_v59 }
 0x1c4   :  { %v2530_v12 = vunpack.i.h.bf16 %v2528_v31  ;;  %v2529_v22 = vunpack.i.l.bf16 %v2528_v31 }
 0x1c6   :  { %v1176_v26 = vsel %vm573_vm2, %v3266_v62, %v2530_v12  ;;  %v1175_v50 = vsel %vm573_vm2, %v3270_v9, %v2529_v22 }
 0x1c7   :  { %v1192_v17 = vsel %vm1179_vm4, %v1175_v50, %v2534_v19  ;;  %v1193_v53 = vsel %vm1179_vm4, %v1176_v26, %v2535_v16 }
 0x1c8   :  { %v1209_v18 = vsel %vm1196_vm5, %v1192_v17, %v2539_v25  ;;  %v1210_v23 = vsel %vm1196_vm5, %v1193_v53, %v2540_v52  ;;  %v2548_v62 = vpop.permute.xlu1 %2547 }
 0x1c9   :  { %v1225_v8 = vpack.c.bf16 %v1210_v23, %v1209_v18  ;;  %v2549_v39 = vunpack.i.l.bf16 %v2548_v62 }
 0x1ca   :  { %v2553_v13 = vpop.permute.xlu2 %2552 }
 0x1cb   :  { %v2543_v63 = vpop.permute.xlu0 %2542  ;;  %v2555_v49 = vunpack.i.h.bf16 %v2553_v13  ;;  %v2554_v34 = vunpack.i.l.bf16 %v2553_v13 }
 0x1cc   :  { %v2545_v14 = vunpack.i.h.bf16 %v2543_v63  ;;  %v2544_v32 = vunpack.i.l.bf16 %v2543_v63 }
 0x1ce   :  { %v1178_v9 = vsel %vm573_vm2, %v3282_v33, %v2545_v14  ;;  %v1177_v6 = vsel %vm573_vm2, %v3286_v42, %v2544_v32  ;;  %v1393_v33 = vpop.f32.mrf.mxu2 }
 0x1cf   :  { %v1194_v61 = vsel %vm1179_vm4, %v1177_v6, %v2549_v39 }
 0x1d0   :  { %v1211_v60 = vsel %vm1196_vm5, %v1194_v61, %v2554_v34 }
 0x1d2   :  { %1356 = vmatmul.bf16.gmra.mxu1 %v1219_v51  ;;  %v2550_v51 = vunpack.i.h.bf16 %v2548_v62 }
 0x1d4   :  { %v1195_v24 = vsel %vm1179_vm4, %v1178_v9, %v2550_v51 }
 0x1d5   :  { %v1212_v27 = vsel %vm1196_vm5, %v1195_v24, %v2555_v49 }
 0x1d6   :  { %v1227_v38 = vpack.c.bf16 %v1212_v27, %v1211_v60  ;;  %v1396_v42 = vpop.f32.mrf.mxu2 }
 0x1de   :  { %v1398_v48 = vpop.f32.mrf.mxu2 }
 0x1e2   :  { %1361 = vmatmul.bf16.gmra.mxu1 %v1221_v15 }
 0x1e6   :  { %v1401_v44 = vpop.f32.mrf.mxu2 }
 0x1ee   :  { %v1403_v28 = vpop.f32.mrf.mxu2 }
 0x1f2   :  { %1366 = vmatmul.bf16.gmra.mxu1 %v1223_v2 }
 0x1f6   :  { %v1406_v29 = vpop.f32.mrf.mxu2 }
 0x1fe   :  { %v1408_v57 = vpop.f32.mrf.mxu2 }
 0x202   :  { %1371 = vmatmul.bf16.gmra.mxu1 %v1225_v8 }
 0x206   :  { %v1411_v45 = vpop.f32.mrf.mxu2 }
 0x20e   :  { %v1413_v46 = vpop.f32.mrf.mxu2 }
 0x212   :  { %1376 = vmatmul.bf16.gmra.mxu1 %v1227_v38 }
 0x216   :  { %v1416_v20 = vpop.f32.mrf.mxu2 }
 0x21e   :  { %v1418_v30 = vpop.f32.mrf.mxu2 }
 0x21f   :  { %v1342_v43 = vpop.f32.mrf.mxu1 }
 0x220   :  { %v3441_v47 = vadd.f32 %v1391_v36, %v1342_v43 }
 0x222   :  { %v1431_v26 = vsel %vm1179_vm4, %v3441_v47, 0.0 }
 0x226   :  { %v1421_v2 = vpop.f32.mrf.mxu2 }
 0x227   :  { %v1344_v37 = vpop.f32.mrf.mxu1 }
 0x228   :  { %v3439_v5 = vadd.f32 %v1393_v33, %v1344_v37 }
 0x22a   :  { %v1432_v22 = vsel %vm1179_vm4, %v3439_v5, 0.0 }
 0x22b   :  { %v1433_v16 = vadd.f32 %v1432_v22, %v1431_v26 }
 0x22e   :  { %v1423_v14 = vpop.f32.mrf.mxu2 }
 0x22f   :  { %v1347_v41 = vpop.f32.mrf.mxu1 }
 0x230   :  { %v3443_v12 = vadd.f32 %v1396_v42, %v1347_v41 }
 0x232   :  { %v1434_v50 = vsel %vm1179_vm4, %v3443_v12, 0.0 }
 0x233   :  { %v1435_v25 = vadd.f32 %v1434_v50, %v1433_v16 }
 0x236   :  { %v1426_v38 = vpop.f32.mrf.mxu2 }
 0x237   :  { %v1349_v54 = vpop.f32.mrf.mxu1 }
 0x238   :  { %v3447_v59 = vadd.f32 %v1398_v48, %v1349_v54 }
 0x23a   :  { %v1436_v63 = vsel %vm1179_vm4, %v3447_v59, 0.0 }
 0x23b   :  { %v1437_v32 = vadd.f32 %v1436_v63, %v1435_v25 }
 0x23f   :  { %v1352_v35 = vpop.f32.mrf.mxu1 }
 0x240   :  { %v3437_v40 = vadd.f32 %v1401_v44, %v1352_v35 }
 0x242   :  { %v1438_v17 = vsel %vm1179_vm4, %v3437_v40, 0.0 }
 0x243   :  { %v1439_v8 = vadd.f32 %v1438_v17, %v1437_v32 }
 0x247   :  { %v1354_v55 = vpop.f32.mrf.mxu1 }
 0x248   :  { %v3455_v52 = vadd.f32 %v1403_v28, %v1354_v55 }
 0x24a   :  { %v1440_v18 = vsel %vm1179_vm4, %v3455_v52, 0.0 }
 0x24b   :  { %v1441_v9 = vadd.f32 %v1440_v18, %v1439_v8 }
 0x24f   :  { %v1357_v15 = vpop.f32.mrf.mxu1 }
 0x250   :  { %v3459_v53 = vadd.f32 %v1406_v29, %v1357_v15  ;;  %v1428_v15 = vpop.f32.mrf.mxu2 }
 0x252   :  { %v1442_v62 = vsel %vm1179_vm4, %v3459_v53, 0.0 }
 0x253   :  { %v1443_v49 = vadd.f32 %v1442_v62, %v1441_v9 }
 0x257   :  { %v1359_v10 = vpop.f32.mrf.mxu1 }
 0x258   :  { %v3463_v23 = vadd.f32 %v1408_v57, %v1359_v10 }
 0x25a   :  { %v1444_v51 = vsel %vm1179_vm4, %v3463_v23, 0.0 }
 0x25b   :  { %v1445_v24 = vadd.f32 %v1444_v51, %v1443_v49 }
 0x25f   :  { %v1362_v58 = vpop.f32.mrf.mxu1 }
 0x260   :  { %v3467_v13 = vadd.f32 %v1411_v45, %v1362_v58 }
 0x262   :  { %v1446_v34 = vsel %vm1179_vm4, %v3467_v13, 0.0 }
 0x263   :  { %v1447_v36 = vadd.f32 %v1446_v34, %v1445_v24 }
 0x267   :  { %v1364_v21 = vpop.f32.mrf.mxu1 }
 0x268   :  { %v3471_v39 = vadd.f32 %v1413_v46, %v1364_v21 }
 0x26a   :  { %v1448_v60 = vsel %vm1179_vm4, %v3471_v39, 0.0 }
 0x26b   :  { %v1449_v48 = vadd.f32 %v1448_v60, %v1447_v36 }
 0x26f   :  { %v1367_v31 = vpop.f32.mrf.mxu1 }
 0x270   :  { %v3475_v61 = vadd.f32 %v1416_v20, %v1367_v31 }
 0x272   :  { %v1450_v33 = vsel %vm1179_vm4, %v3475_v61, 0.0 }
 0x273   :  { %v1451_v41 = vadd.f32 %v1450_v33, %v1449_v48 }
 0x277   :  { %v1369_v0 = vpop.f32.mrf.mxu1 }
 0x278   :  { %v3479_v27 = vadd.f32 %v1418_v30, %v1369_v0 }
 0x27a   :  { %v1452_v37 = vsel %vm1179_vm4, %v3479_v27, 0.0 }
 0x27b   :  { %v1453_v29 = vadd.f32 %v1452_v37, %v1451_v41 }
 0x27f   :  { %v1372_v19 = vpop.f32.mrf.mxu1 }
 0x280   :  { %v3483_v42 = vadd.f32 %v1421_v2, %v1372_v19 }
 0x282   :  { %v1454_v28 = vsel %vm1179_vm4, %v3483_v42, 0.0 }
 0x283   :  { %v1455_v57 = vadd.f32 %v1454_v28, %v1453_v29 }
 0x287   :  { %v1374_v6 = vpop.f32.mrf.mxu1 }
 0x288   :  { %v3487_v44 = vadd.f32 %v1423_v14, %v1374_v6 }
 0x28a   :  { %v1456_v35 = vsel %vm1179_vm4, %v3487_v44, 0.0 }
 0x28b   :  { %v1457_v45 = vadd.f32 %v1456_v35, %v1455_v57 }
 0x28f   :  { %v1377_v43 = vpop.f32.mrf.mxu1 }
 0x290   :  { %v3491_v54 = vadd.f32 %v1426_v38, %v1377_v43 }
 0x292   :  { %v1458_v55 = vsel %vm1179_vm4, %v3491_v54, 0.0 }
 0x293   :  { %v1459_v58 = vadd.f32 %v1458_v55, %v1457_v45 }
 0x297   :  { %v1379_v10 = vpop.f32.mrf.mxu1 }
 0x298   :  { %v3497_v46 = vadd.f32 %v1428_v15, %v1379_v10 }
 0x29a   :  { %v1460_v20 = vsel %vm1179_vm4, %v3497_v46, 0.0 }
 0x29b   :  { %v1461_v21 = vadd.f32 %v1460_v20, %v1459_v58 }
 0x29d   :  { %v1462_v30 = vrot.slane %v1461_v21, 4 }
 0x29f   :  { %v1463_v31 = vadd.f32 %v1462_v30, %v1461_v21 }
 0x2a1   :  { %v1464_v0 = vrot.slane %v1463_v31, 2 }
 0x2a3   :  { %v1465_v2 = vadd.f32 %v1464_v0, %v1463_v31 }
 0x2a5   :  { %v1466_v22 = vrot.slane %v1465_v2, 1 }
 0x2a7   :  { %v1467_v26 = vadd.f32 %v1466_v22, %v1465_v2 }
 0x2a9   :  { %v3502_v50 = vmul.f32 %v1467_v26, %v2790_v4 }
 0x2ab   :  { %v1469_v16 = vsub.f32 %v3441_v47, %v3502_v50  ;;  %v1470_v19 = vsub.f32 %v3439_v5, %v3502_v50  ;;  %v1471_v63 = vsub.f32 %v3443_v12, %v3502_v50  ;;  %v1472_v25 = vsub.f32 %v3447_v59, %v3502_v50 }
 0x2ac   :  { %v1473_v32 = vsub.f32 %v3437_v40, %v3502_v50  ;;  %v1474_v8 = vsub.f32 %v3455_v52, %v3502_v50  ;;  %v1475_v49 = vsub.f32 %v3459_v53, %v3502_v50  ;;  %v1476_v38 = vsub.f32 %v3463_v23, %v3502_v50 }
 0x2ad   :  { %v1485_v17 = vmul.f32 %v1469_v16, %v1469_v16  ;;  %v1486_v14 = vmul.f32 %v1470_v19, %v1470_v19  ;;  %v1487_v18 = vmul.f32 %v1471_v63, %v1471_v63  ;;  %v1488_v62 = vmul.f32 %v1472_v25, %v1472_v25 }
 0x2ae   :  { %v1489_v34 = vmul.f32 %v1473_v32, %v1473_v32  ;;  %v1490_v36 = vmul.f32 %v1474_v8, %v1474_v8  ;;  %v1477_v43 = vsub.f32 %v3467_v13, %v3502_v50  ;;  %v1491_v37 = vmul.f32 %v1475_v49, %v1475_v49 }
 0x2af   :  { %v1501_v9 = vsel %vm1179_vm4, %v1485_v17, 0.0  ;;  %v1502_v6 = vsel %vm1179_vm4, %v1486_v14, 0.0  ;;  %v1504_v24 = vsel %vm1179_vm4, %v1487_v18, 0.0  ;;  %v1506_v33 = vsel %vm1179_vm4, %v1488_v62, 0.0 }
 0x2b0   :  { %v1503_v51 = vadd.f32 %v1502_v6, %v1501_v9  ;;  %v1508_v41 = vsel %vm1179_vm4, %v1489_v34, 0.0  ;;  %v1478_v29 = vsub.f32 %v3471_v39, %v3502_v50  ;;  %v1492_v35 = vmul.f32 %v1476_v38, %v1476_v38 }
 0x2b1   :  { %v1510_v57 = vsel %vm1179_vm4, %v1490_v36, 0.0  ;;  %v1479_v15 = vsub.f32 %v3475_v61, %v3502_v50  ;;  %v1493_v45 = vmul.f32 %v1477_v43, %v1477_v43  ;;  %v1512_v10 = vsel %vm1179_vm4, %v1491_v37, 0.0 }
 0x2b2   :  { %v1505_v60 = vadd.f32 %v1504_v24, %v1503_v51  ;;  %v1480_v20 = vsub.f32 %v3479_v27, %v3502_v50  ;;  %v1494_v21 = vmul.f32 %v1478_v29, %v1478_v29  ;;  %v1514_v30 = vsel %vm1179_vm4, %v1492_v35, 0.0 }
 0x2b3   :  { %v1481_v0 = vsub.f32 %v3483_v42, %v3502_v50  ;;  %v1495_v2 = vmul.f32 %v1479_v15, %v1479_v15  ;;  %v1516_v22 = vsel %vm1179_vm4, %v1493_v45, 0.0  ;;  %v1482_v16 = vsub.f32 %v3487_v44, %v3502_v50  ;;  %v2426_v15 = vld [vmem:[%s4002_s3 + $0x58] sm:$0xff] }
 0x2b4   :  { %v1507_v48 = vadd.f32 %v1506_v33, %v1505_v60  ;;  %v1496_v19 = vmul.f32 %v1480_v20, %v1480_v20  ;;  %v1518_v63 = vsel %vm1179_vm4, %v1494_v21, 0.0  ;;  %v1483_v17 = vsub.f32 %v3491_v54, %v3502_v50  ;;  %1990 = vmatpush.bf16.msrb.mxu0 %v2426_v15  ;;  %v2423_v21 = vld [vmem:[%s4002_s3 + $0x40] sm:$0xff] }
 0x2b5   :  { %v1497_v14 = vmul.f32 %v1481_v0, %v1481_v0  ;;  %v1520_v32 = vsel %vm1179_vm4, %v1495_v2, 0.0  ;;  %v1484_v8 = vsub.f32 %v3497_v46, %v3502_v50  ;;  %v1498_v62 = vmul.f32 %v1482_v16, %v1482_v16 }
 0x2b6   :  { %v1509_v28 = vadd.f32 %v1508_v41, %v1507_v48  ;;  %v1522_v9 = vsel %vm1179_vm4, %v1496_v19, 0.0  ;;  %v1499_v51 = vmul.f32 %v1483_v17, %v1483_v17 }
 0x2b7   :  { %v1524_v49 = vsel %vm1179_vm4, %v1497_v14, 0.0  ;;  %v1500_v24 = vmul.f32 %v1484_v8, %v1484_v8  ;;  %v1526_v60 = vsel %vm1179_vm4, %v1498_v62, 0.0 }
 0x2b8   :  { %v1511_v55 = vadd.f32 %v1510_v57, %v1509_v28  ;;  %v1528_v36 = vsel %vm1179_vm4, %v1499_v51, 0.0 }
 0x2b9   :  { %v1530_v48 = vsel %vm1179_vm4, %v1500_v24, 0.0 }
 0x2ba   :  { %v1513_v58 = vadd.f32 %v1512_v10, %v1511_v55  ;;  %v2425_v10 = vld [vmem:[%s4002_s3 + $0x50] sm:$0xff] }
 0x2bb   :  { %1991 = vmatpush.bf16.msrb.mxu0 %v2425_v10 }
 0x2bc   :  { %v1515_v31 = vadd.f32 %v1514_v30, %v1513_v58  ;;  %v2424_v58 = vld [vmem:[%s4002_s3 + $0x48] sm:$0xff] }
 0x2be   :  { %v1517_v26 = vadd.f32 %v1516_v22, %v1515_v31  ;;  %v1539_v22 = vld [vmem:[%s4005_s6] sm:$0x1] }
 0x2bf   :  { %1992 = vmatpush.bf16.msrb.mxu0 %v2424_v58 }
 0x2c0   :  { %v1519_v25 = vadd.f32 %v1518_v63, %v1517_v26  ;;  %v1552_v63 = vld [vmem:[%s4006_s7] sm:$0x1] }
 0x2c2   :  { %v1521_v18 = vadd.f32 %v1520_v32, %v1519_v25 }
 0x2c3   :  { %1993 = vmatpush.bf16.msrb.mxu0 %v2423_v21 }
 0x2c4   :  { %v1523_v6 = vadd.f32 %v1522_v9, %v1521_v18 }
 0x2c6   :  { %v1525_v34 = vadd.f32 %v1524_v49, %v1523_v6 }
 0x2c8   :  { %v1527_v38 = vadd.f32 %v1526_v60, %v1525_v34 }
 0x2ca   :  { %v1529_v33 = vadd.f32 %v1528_v36, %v1527_v38 }
 0x2cc   :  { %v1531_v43 = vadd.f32 %v1530_v48, %v1529_v33 }
 0x2ce   :  { %v1532_v37 = vrot.slane %v1531_v43, 4 }
 0x2d0   :  { %v1533_v41 = vadd.f32 %v1532_v37, %v1531_v43 }
 0x2d2   :  { %v1534_v28 = vrot.slane %v1533_v41, 2 }
 0x2d4   :  { %v1535_v29 = vadd.f32 %v1534_v28, %v1533_v41 }
 0x2d6   :  { %v1536_v35 = vrot.slane %v1535_v29, 1 }
 0x2d8   :  { %v1537_v57 = vadd.f32 %v1536_v35, %v1535_v29 }
 0x2da   :  { %v1538_v55 = vmul.f32 %v1537_v57, %v2790_v4 }
 0x2dc   :  { %v1540_v45 = vadd.f32 1e-05, %v1538_v55 }
 0x2de   :  { %2600 = vrsqrt.f32 %v1540_v45  ;;  %vm1547_vm6 = vweird.f32 %v1540_v45 }
 0x2e4   :  { %v2601_v20 = vpop.eup %2600 }
 0x2e5   :  { %v1542_v30 = vmul.f32 %v2601_v20, %v1540_v45  ;;  %vm1548_vm2 = vweird.f32 %v2601_v20 }
 0x2e6   :  { %vm1549_vm7 = vmor %vm1547_vm6, %vm1548_vm2 }
 0x2e7   :  { %v1543_v31 = vmul.f32 %v2601_v20, %v1542_v30 }
 0x2e9   :  { %v1544_v0 = vmul.f32 0.5, %v1543_v31 }
 0x2eb   :  { %v1545_v2 = vsub.f32 1.5, %v1544_v0 }
 0x2ed   :  { %v1546_v26 = vmul.f32 %v2601_v20, %v1545_v2 }
 0x2ef   :  { %v1550_v16 = vsel %vm1549_vm7, %v2601_v20, %v1546_v26 }
 0x2f0   :  { %v1551_v19 = vmul.f32 %v1550_v16, %v1539_v22 }
 0x2f2   :  { %v1553_v25 = vmul.f32 %v1551_v19, %v3502_v50  ;;  %v3572_v17 = vperm.slane %v1551_v19, 0 }
 0x2f4   :  { %v1554_v14 = vsub.f32 %v1552_v63, %v1553_v25  ;;  %v1573_v32 = vmul.f32 %v3572_v17, %v3497_v46  ;;  %v1562_v18 = vmul.f32 %v3572_v17, %v3437_v40  ;;  %v1563_v8 = vmul.f32 %v3572_v17, %v3455_v52 }
 0x2f5   :  { %v1560_v62 = vmul.f32 %v3572_v17, %v3443_v12  ;;  %v1561_v9 = vmul.f32 %v3572_v17, %v3447_v59  ;;  %v1558_v50 = vmul.f32 %v3572_v17, %v3441_v47  ;;  %v1559_v46 = vmul.f32 %v3572_v17, %v3439_v5 }
 0x2f6   :  { %v3584_v6 = vperm.slane %v1554_v14, 0  ;;  %v1568_v40 = vmul.f32 %v3572_v17, %v3475_v61  ;;  %v1569_v52 = vmul.f32 %v3572_v17, %v3479_v27  ;;  %v1566_v12 = vmul.f32 %v3572_v17, %v3467_v13 }
 0x2f7   :  { %v1567_v59 = vmul.f32 %v3572_v17, %v3471_v39  ;;  %v1564_v51 = vmul.f32 %v3572_v17, %v3459_v53  ;;  %v1565_v61 = vmul.f32 %v3572_v17, %v3463_v23  ;;  %v1572_v38 = vmul.f32 %v3572_v17, %v3491_v54 }
 0x2f8   :  { %v1581_v47 = vadd.f32 %v3584_v6, %v1562_v18  ;;  %v1582_v49 = vadd.f32 %v3584_v6, %v1563_v8  ;;  %v1579_v5 = vadd.f32 %v3584_v6, %v1560_v62  ;;  %v1580_v27 = vadd.f32 %v3584_v6, %v1561_v9 }
 0x2f9   :  { %v1577_v34 = vadd.f32 %v3584_v6, %v1558_v50  ;;  %v1578_v13 = vadd.f32 %v3584_v6, %v1559_v46  ;;  %v1587_v39 = vadd.f32 %v3584_v6, %v1568_v40  ;;  %v1588_v53 = vadd.f32 %v3584_v6, %v1569_v52 }
 0x2fa   :  { %v1597_v24 = vmul.f32 0.01, %v1581_v47  ;;  %v1598_v60 = vmul.f32 0.01, %v1582_v49  ;;  %v1592_v36 = vadd.f32 %v3584_v6, %v1573_v32  ;;  %v1595_v33 = vmul.f32 0.01, %v1579_v5 }
 0x2fb   :  { %v1596_v48 = vmul.f32 0.01, %v1580_v27  ;;  %v1593_v23 = vmul.f32 0.01, %v1577_v34  ;;  %v1594_v41 = vmul.f32 0.01, %v1578_v13  ;;  %v1585_v28 = vadd.f32 %v3584_v6, %v1566_v12 }
 0x2fc   :  { %v3613_v43 = vmax.f32 %v1581_v47, %v1597_v24  ;;  %v3615_v37 = vmax.f32 %v1582_v49, %v1598_v60  ;;  %v3618_v29 = vmax.f32 %v1579_v5, %v1595_v33  ;;  %v1603_v55 = vmul.f32 0.01, %v1587_v39 }
 0x2fd   :  { %v3620_v35 = vmax.f32 %v1580_v27, %v1596_v48  ;;  %v3622_v57 = vmax.f32 %v1577_v34, %v1593_v23  ;;  %v3626_v15 = vmax.f32 %v1578_v13, %v1594_v41  ;;  %v1604_v45 = vmul.f32 0.01, %v1588_v53 }
 0x2fe   :  { %v2566_v54 = vpack.i.bf16 %v3615_v37, %v3613_v43  ;;  %v1586_v10 = vadd.f32 %v3584_v6, %v1567_v59  ;;  %v1608_v58 = vmul.f32 0.01, %v1592_v36  ;;  %v1675_v30 = vrot.slane %v3618_v29, 1 }
 0x2ff   :  { %v2561_v20 = vpack.i.bf16 %v3620_v35, %v3618_v29  ;;  %v1673_v21 = vrot.slane %v3622_v57, 1  ;;  %v2556_v31 = vpack.i.bf16 %v3626_v15, %v3622_v57  ;;  %v1674_v0 = vrot.slane %v3626_v15, 1 }
 0x300   :  { %2567 = vrot.lane.b32.xlu2 %v2566_v54, %s2632_s4  ;;  %v1601_v2 = vmul.f32 0.01, %v1585_v28  ;;  %v1602_v22 = vmul.f32 0.01, %v1586_v10  ;;  %v3638_v26 = vmax.f32 %v1587_v39, %v1603_v55  ;;  %v1583_v16 = vadd.f32 %v3584_v6, %v1564_v51 }
 0x301   :  { %2562 = vrot.lane.b32.xlu1 %v2561_v20, %s2632_s4  ;;  %v1584_v19 = vadd.f32 %v3584_v6, %v1565_v61  ;;  %v1591_v63 = vadd.f32 %v3584_v6, %v1572_v38  ;;  %2557 = vrot.lane.b32.xlu0 %v2556_v31, %s2632_s4  ;;  %v1702_v25 = vsel %vm889_vm8, %v1674_v0, %v1675_v30  ;;  %v1676_v34 = vrot.slane %v3620_v35, 1 }
 0x302   :  { %v1703_v14 = vsel %vm889_vm8, %v1673_v21, %v1674_v0  ;;  %v3650_v32 = vmax.f32 %v1588_v53, %v1604_v45  ;;  %v3652_v18 = vmax.f32 %v1585_v28, %v1601_v2  ;;  %v3654_v62 = vmax.f32 %v1586_v10, %v1602_v22 }
 0x303   :  { %v1802_v8 = vpack.c.bf16 %v1702_v25, %v1703_v14  ;;  %v1599_v9 = vmul.f32 0.01, %v1583_v16  ;;  %v1600_v50 = vmul.f32 0.01, %v1584_v19  ;;  %v1607_v46 = vmul.f32 0.01, %v1591_v63 }
 0x304   :  { %v1570_v40 = vmul.f32 %v3572_v17, %v3483_v42  ;;  %v1571_v52 = vmul.f32 %v3572_v17, %v3487_v44  ;;  %v2581_v51 = vpack.i.bf16 %v3650_v32, %v3638_v26  ;;  %v2576_v5 = vpack.i.bf16 %v3654_v62, %v3652_v18 }
 0x305   :  { %2389 = vmatmul.msk.bf16.vlgmr.msrb.gmra.mxu0 %vm1179_vm4, %v1802_v8  ;;  %v3661_v12 = vmax.f32 %v1583_v16, %v1599_v9  ;;  %v3663_v59 = vmax.f32 %v1584_v19, %v1600_v50  ;;  %v3671_v42 = vmax.f32 %v1592_v36, %v1608_v58  ;;  %v3676_v17 = vmax.f32 %v1591_v63, %v1607_v46 }
 0x306   :  { %v1589_v47 = vadd.f32 %v3584_v6, %v1570_v40  ;;  %v1590_v49 = vadd.f32 %v3584_v6, %v1571_v52  ;;  %v1677_v39 = vrot.slane %v3613_v43, 1  ;;  %v1683_v24 = vrot.slane %v3638_v26, 1 }
 0x307   :  { %v2571_v44 = vpack.i.bf16 %v3663_v59, %v3661_v12  ;;  %v1640_v60 = vrot.slane %v3671_v42, 7  ;;  %v2591_v53 = vpack.i.bf16 %v3671_v42, %v3676_v17  ;;  %v1684_v38 = vrot.slane %v3650_v32, 1 }
 0x308   :  { %2582 = vrot.lane.b32.xlu2 %v2581_v51, %s2632_s4  ;;  %v1605_v61 = vmul.f32 0.01, %v1589_v47  ;;  %v1606_v27 = vmul.f32 0.01, %v1590_v49  ;;  %v1701_v36 = vsel %vm889_vm8, %v1675_v30, %v1676_v34  ;;  %v1687_v23 = vrot.slane %v3676_v17, 1 }
 0x309   :  { %2577 = vrot.lane.b32.xlu1 %v2576_v5, %s2632_s4  ;;  %2572 = vrot.lane.b32.xlu0 %v2571_v44, %s2632_s4  ;;  %v1700_v28 = vsel %vm889_vm8, %v1676_v34, %v1677_v39  ;;  %v3696_v55 = vsel %vm889_vm8, %v1683_v24, %v1684_v38  ;;  %v1688_v54 = vrot.slane %v3671_v42, 1  ;;  %v1625_v20 = vrot.slane %v3622_v57, 7 }
 0x30a   :  { %v1621_v6 = vmax.f32 %v1589_v47, %v1605_v61  ;;  %v1622_v13 = vmax.f32 %v1590_v49, %v1606_v27  ;;  %v1626_v16 = vrot.slane %v3626_v15, 7  ;;  %v1627_v63 = vrot.slane %v3618_v29, 7 }
 0x30b   :  { %v3718_v0 = vsel %vm889_vm8, %v1687_v23, %v1688_v54  ;;  %v1704_v2 = vsel %vm889_vm8, %v1688_v54, %v1673_v21  ;;  %v3731_v19 = vsel %vm840_vm10, %v1640_v60, %v1625_v20  ;;  %v1804_v25 = vpack.c.bf16 %v1700_v28, %v1701_v36 }
 0x30c   :  { %v1685_v33 = vrot.slane %v1621_v6, 1  ;;  %v1686_v48 = vrot.slane %v1622_v13, 1  ;;  %v2586_v41 = vpack.i.bf16 %v1622_v13, %v1621_v6  ;;  %v3726_v22 = vmul.f32 %v3177_v11, %v1704_v2 }
 0x30d   :  { %v1628_v57 = vrot.slane %v3620_v35, 7  ;;  %v1629_v21 = vrot.slane %v3613_v43, 7  ;;  %v1630_v14 = vrot.slane %v3615_v37, 7  ;;  %v3742_v15 = vsel %vm840_vm10, %v1625_v20, %v1626_v16 }
 0x30e   :  { %v3701_v45 = vsel %vm889_vm8, %v1684_v38, %v1685_v33  ;;  %v3705_v10 = vsel %vm889_vm8, %v1686_v48, %v1687_v23  ;;  %v3709_v58 = vsel %vm889_vm8, %v1685_v33, %v1686_v48  ;;  %v1816_v11 = vpack.c.bf16 %v3726_v22, %v3718_v0 }
 0x30f   :  { %v1812_v30 = vpack.c.bf16 %v3701_v45, %v3696_v55  ;;  %v1814_v31 = vpack.c.bf16 %v3705_v10, %v3709_v58  ;;  %v3746_v8 = vsel %vm840_vm10, %v1626_v16, %v1627_v63  ;;  %v1631_v29 = vrot.slane %v3661_v12, 7 }
 0x310   :  { %v3751_v35 = vsel %vm840_vm10, %v1627_v63, %v1628_v57  ;;  %v1651_v43 = vsel %vm840_vm10, %v1629_v21, %v1630_v14  ;;  %v1652_v9 = vsel %vm840_vm10, %v1628_v57, %v1629_v21  ;;  %v1632_v50 = vrot.slane %v3663_v59, 7  ;;  %v2418_v63 = vld [vmem:[%s4002_s3 + $0x18] sm:$0xff] }
 0x311   :  { %2592 = vrot.lane.b32.xlu1 %v2591_v53, %s2632_s4  ;;  %2587 = vrot.lane.b32.xlu0 %v2586_v41, %s2632_s4  ;;  %v3761_v46 = vsel %vm840_vm10, %v1630_v14, %v1631_v29  ;;  %v1633_v40 = vrot.slane %v3652_v18, 7  ;;  %v1634_v52 = vrot.slane %v3654_v62, 7  ;;  %v1635_v51 = vrot.slane %v3638_v26, 7  ;;  %v2417_v26 = vld [vmem:[%s4002_s3 + $0x10] sm:$0xff] }
 0x312   :  { %v3768_v47 = vsel %vm840_vm10, %v1631_v29, %v1632_v50  ;;  %v1636_v49 = vrot.slane %v3650_v32, 7  ;;  %v1637_v5 = vrot.slane %v1621_v6, 7  ;;  %v1638_v42 = vrot.slane %v1622_v13, 7 }
 0x313   :  { %v3773_v44 = vsel %vm840_vm10, %v1633_v40, %v1634_v52  ;;  %v3777_v61 = vsel %vm840_vm10, %v1632_v50, %v1633_v40  ;;  %v1646_v27 = vsel %vm840_vm10, %v1634_v52, %v1635_v51  ;;  %v1639_v34 = vrot.slane %v3676_v17, 7 }
 0x314   :  { %v1645_v53 = vsel %vm840_vm10, %v1635_v51, %v1636_v49  ;;  %v3786_v32 = vsel %vm840_vm10, %v1637_v5, %v1638_v42  ;;  %v3790_v6 = vsel %vm840_vm10, %v1636_v49, %v1637_v5  ;;  %v1678_v17 = vrot.slane %v3615_v37, 1 }
 0x315   :  { %2390 = vmatmul.msk.bf16.gmra.mxu0 %vm1179_vm4, %v1804_v25  ;;  %v3794_v13 = vsel %vm840_vm10, %v1639_v34, %v1640_v60  ;;  %v3798_v38 = vsel %vm840_vm10, %v1638_v42, %v1639_v34  ;;  %v1679_v36 = vrot.slane %v3661_v12, 1  ;;  %v1680_v60 = vrot.slane %v3663_v59, 1 }
 0x316   :  { %v1699_v48 = vsel %vm889_vm8, %v1677_v39, %v1678_v17  ;;  %v1681_v41 = vrot.slane %v3652_v18, 1  ;;  %v2422_v39 = vld [vmem:[%s4002_s3 + $0x38] sm:$0xff]  ;;  %v2421_v18 = vld [vmem:[%s4002_s3 + $0x30] sm:$0xff]  ;;  %v1682_v59 = vrot.slane %v3654_v62, 1  ;;  %v2419_v62 = vld [vmem:[%s4002_s3 + $0x20] sm:$0xff] }
 0x317   :  { %v1698_v33 = vsel %vm889_vm8, %v1678_v17, %v1679_v36  ;;  %v1697_v12 = vsel %vm889_vm8, %v1679_v36, %v1680_v60  ;;  %1937 = vmatpush.bf16.msrb.mxu3 %v2422_v39 }
 0x318   :  { %v1806_v23 = vpack.c.bf16 %v1698_v33, %v1699_v48  ;;  %v1696_v28 = vsel %vm889_vm8, %v1680_v60, %v1681_v41  ;;  %v1694_v20 = vsel %vm889_vm8, %v1682_v59, %v1683_v24  ;;  %v1695_v2 = vsel %vm889_vm8, %v1681_v41, %v1682_v59  ;;  %v2415_v24 = vld [vmem:[%s4002_s3] sm:$0xff] }
 0x319   :  { %v1712_v37 = vmul.f32 %v3012_v3, %v1696_v28  ;;  %v2420_v3 = vld [vmem:[%s4002_s3 + $0x28] sm:$0xff]  ;;  %v1810_v16 = vpack.c.bf16 %v1694_v20, %v1695_v2 }
 0x31b   :  { %v1808_v54 = vpack.c.bf16 %v1712_v37, %v1697_v12  ;;  %1938 = vmatpush.bf16.msrb.mxu3 %v2421_v18 }
 0x31f   :  { %1939 = vmatpush.bf16.msrb.mxu3 %v2420_v3 }
 0x323   :  { %1940 = vmatpush.bf16.msrb.mxu3 %v2419_v62 }
 0x325   :  { %2391 = vmatmul.msk.bf16.gmra.mxu0 %vm1179_vm4, %v1806_v23  ;;  %v1665_v23 = vmul.f32 %v3078_v1, %v3777_v61 }
 0x327   :  { %1941 = vmatpush.bf16.msrb.mxu3 %v2418_v63 }
 0x32b   :  { %1942 = vmatpush.bf16.msrb.mxu3 %v2417_v26 }
 0x32f   :  { %1943 = vmatpush.bf16.msrb.mxu3 %v2416_v56 }
 0x333   :  { %1944 = vmatpush.bf16.msrb.mxu3 %v2415_v24 }
 0x335   :  { %2392 = vmatmul.msk.bf16.gmra.mxu0 %vm1179_vm4, %v1808_v54 }
 0x345   :  { %2393 = vmatmul.msk.bf16.gmra.mxu0 %vm1179_vm4, %v1810_v16 }
 0x355   :  { %2394 = vmatmul.msk.bf16.gmra.mxu0 %vm1179_vm4, %v1812_v30 }
 0x35a   :  { %v2568_v25 = vpop.permute.xlu2 %2567 }
 0x35b   :  { %v2570_v57 = vunpack.i.h.bf16 %v2568_v25  ;;  %v2569_v21 = vunpack.i.l.bf16 %v2568_v25 }
 0x35d   :  { %v1789_v14 = vsel %vm1179_vm4, %v1652_v9, %v2569_v21  ;;  %v1790_v29 = vsel %vm1179_vm4, %v1651_v43, %v2570_v57 }
 0x35e   :  { %v1805_v45 = vpack.c.bf16 %v1790_v29, %v1789_v14 }
 0x362   :  { %v2583_v55 = vpop.permute.xlu2 %2582 }
 0x363   :  { %v2585_v30 = vunpack.i.h.bf16 %v2583_v55  ;;  %v2584_v50 = vunpack.i.l.bf16 %v2583_v55 }
 0x365   :  { %2395 = vmatmul.msk.bf16.gmra.mxu0 %vm1179_vm4, %v1814_v31  ;;  %v1795_v40 = vsel %vm1179_vm4, %v1646_v27, %v2584_v50  ;;  %v1796_v52 = vsel %vm1179_vm4, %v1645_v53, %v2585_v30  ;;  %v1657_v31 = vmul.f32 %v2870_v7, %v3731_v19 }
 0x366   :  { %v1811_v51 = vpack.c.bf16 %v1796_v52, %v1795_v40 }
 0x373   :  { %v2563_v49 = vpop.permute.xlu1 %2562  ;;  %v2558_v34 = vpop.permute.xlu0 %2557 }
 0x374   :  { %v2565_v5 = vunpack.i.h.bf16 %v2563_v49  ;;  %v2564_v42 = vunpack.i.l.bf16 %v2563_v49  ;;  %v2560_v10 = vunpack.i.h.bf16 %v2558_v34  ;;  %v2559_v58 = vunpack.i.l.bf16 %v2558_v34 }
 0x375   :  { %2396 = vmatmul.msk.bf16.gmra.mxu0 %vm1179_vm4, %v1816_v11 }
 0x376   :  { %v1787_v43 = vsel %vm1179_vm4, %v3746_v8, %v2564_v42  ;;  %v1788_v9 = vsel %vm1179_vm4, %v3751_v35, %v2565_v5  ;;  %v1785_v27 = vsel %vm1179_vm4, %v1657_v31, %v2559_v58  ;;  %v1786_v53 = vsel %vm1179_vm4, %v3742_v15, %v2560_v10 }
 0x377   :  { %v1803_v17 = vpack.c.bf16 %v1788_v9, %v1787_v43  ;;  %v1801_v36 = vpack.c.bf16 %v1786_v53, %v1785_v27 }
 0x379   :  { %1945 = vmatmul.bf16.vlgmr.msrb.gmra.mxu3 %v1801_v36 }
 0x37b   :  { %v2573_v0 = vpop.permute.xlu0 %2572  ;;  %v2578_v33 = vpop.permute.xlu1 %2577 }
 0x37c   :  { %v2575_v22 = vunpack.i.h.bf16 %v2573_v0  ;;  %v2574_v11 = vunpack.i.l.bf16 %v2573_v0  ;;  %v2580_v35 = vunpack.i.h.bf16 %v2578_v33  ;;  %v2579_v48 = vunpack.i.l.bf16 %v2578_v33 }
 0x37e   :  { %v1791_v7 = vsel %vm1179_vm4, %v3761_v46, %v2574_v11  ;;  %v1792_v19 = vsel %vm1179_vm4, %v3768_v47, %v2575_v22  ;;  %v1793_v15 = vsel %vm1179_vm4, %v1665_v23, %v2579_v48  ;;  %v1794_v60 = vsel %vm1179_vm4, %v3773_v44, %v2580_v35 }
 0x37f   :  { %v1807_v8 = vpack.c.bf16 %v1792_v19, %v1791_v7  ;;  %v1809_v37 = vpack.c.bf16 %v1794_v60, %v1793_v15 }
 0x382   :  { %v1995_v3 = vpop.f32.mrf.mxu0 }
 0x383   :  { %v2593_v41 = vpop.permute.xlu1 %2592  ;;  %v2588_v28 = vpop.permute.xlu0 %2587 }
 0x384   :  { %v2595_v12 = vunpack.i.h.bf16 %v2593_v41  ;;  %v2594_v46 = vunpack.i.l.bf16 %v2593_v41  ;;  %v2590_v54 = vunpack.i.h.bf16 %v2588_v28  ;;  %v2589_v39 = vunpack.i.l.bf16 %v2588_v28 }
 0x386   :  { %v1797_v47 = vsel %vm1179_vm4, %v3790_v6, %v2589_v39  ;;  %v1798_v18 = vsel %vm1179_vm4, %v3786_v32, %v2590_v54  ;;  %v1799_v1 = vsel %vm1179_vm4, %v3798_v38, %v2594_v46  ;;  %v1800_v44 = vsel %vm1179_vm4, %v3794_v13, %v2595_v12 }
 0x387   :  { %v1813_v61 = vpack.c.bf16 %v1798_v18, %v1797_v47  ;;  %v1815_v59 = vpack.c.bf16 %v1800_v44, %v1799_v1 }
 0x389   :  { %1950 = vmatmul.bf16.gmra.mxu3 %v1803_v17 }
 0x38a   :  { %v1997_v20 = vpop.f32.mrf.mxu0 }
 0x392   :  { %v2000_v6 = vpop.f32.mrf.mxu0 }
 0x399   :  { %1955 = vmatmul.bf16.gmra.mxu3 %v1805_v45 }
 0x39a   :  { %v2002_v2 = vpop.f32.mrf.mxu0 }
 0x3a2   :  { %v2005_v62 = vpop.f32.mrf.mxu0 }
 0x3a9   :  { %1960 = vmatmul.bf16.gmra.mxu3 %v1807_v8 }
 0x3aa   :  { %v2007_v38 = vpop.f32.mrf.mxu0 }
 0x3b2   :  { %v2010_v56 = vpop.f32.mrf.mxu0 }
 0x3b9   :  { %1965 = vmatmul.bf16.gmra.mxu3 %v1809_v37 }
 0x3ba   :  { %v2012_v25 = vpop.f32.mrf.mxu0 }
 0x3c2   :  { %v2015_v14 = vpop.f32.mrf.mxu0 }
 0x3c9   :  { %1970 = vmatmul.bf16.gmra.mxu3 %v1811_v51 }
 0x3ca   :  { %v2017_v55 = vpop.f32.mrf.mxu0 }
 0x3d2   :  { %v2020_v30 = vpop.f32.mrf.mxu0 }
 0x3d9   :  { %1975 = vmatmul.bf16.gmra.mxu3 %v1813_v61 }
 0x3da   :  { %v2022_v40 = vpop.f32.mrf.mxu0 }
 0x3e2   :  { %v2025_v49 = vpop.f32.mrf.mxu0 }
 0x3e9   :  { %1980 = vmatmul.bf16.gmra.mxu3 %v1815_v59 }
 0x3ea   :  { %v2027_v53 = vpop.f32.mrf.mxu0 }
 0x3f2   :  { %v2030_v23 = vpop.f32.mrf.mxu0 }
 0x3fa   :  { %v2032_v18 = vpop.f32.mrf.mxu0 }
 0x3fc   :  { %v1946_v16 = vpop.f32.mrf.mxu3 }
 0x3fd   :  { %v3893_v42 = vadd.f32 %v1995_v3, %v1946_v16 }
 0x404   :  { %v1948_v32 = vpop.f32.mrf.mxu3 }
 0x405   :  { %v3891_v5 = vadd.f32 %v1997_v20, %v1948_v32 }
 0x407   :  { %v2035_v10 = vadd.f32 %v3891_v5, %v3893_v42 }
 0x40c   :  { %v1951_v63 = vpop.f32.mrf.mxu3 }
 0x40d   :  { %v3895_v34 = vadd.f32 %v2000_v6, %v1951_v63 }
 0x40f   :  { %v2036_v43 = vadd.f32 %v2035_v10, %v3895_v34 }
 0x414   :  { %v1953_v26 = vpop.f32.mrf.mxu3 }
 0x415   :  { %v3899_v58 = vadd.f32 %v2002_v2, %v1953_v26 }
 0x417   :  { %v2037_v9 = vadd.f32 %v2036_v43, %v3899_v58 }
 0x41c   :  { %v1956_v13 = vpop.f32.mrf.mxu3 }
 0x41d   :  { %v3889_v24 = vadd.f32 %v2005_v62, %v1956_v13 }
 0x41f   :  { %v2038_v17 = vadd.f32 %v2037_v9, %v3889_v24 }
 0x424   :  { %v1958_v57 = vpop.f32.mrf.mxu3 }
 0x425   :  { %v3903_v27 = vadd.f32 %v2007_v38, %v1958_v57 }
 0x427   :  { %v2039_v0 = vadd.f32 %v2038_v17, %v3903_v27 }
 0x42c   :  { %v1961_v21 = vpop.f32.mrf.mxu3 }
 0x42d   :  { %v3906_v36 = vadd.f32 %v2010_v56, %v1961_v21 }
 0x42f   :  { %v2040_v33 = vadd.f32 %v2039_v0, %v3906_v36 }
 0x434   :  { %v1963_v29 = vpop.f32.mrf.mxu3 }
 0x435   :  { %v3909_v22 = vadd.f32 %v2012_v25, %v1963_v29 }
 0x437   :  { %v2041_v19 = vadd.f32 %v2040_v33, %v3909_v22 }
 0x43c   :  { %v1966_v45 = vpop.f32.mrf.mxu3 }
 0x43d   :  { %v3912_v7 = vadd.f32 %v2015_v14, %v1966_v45 }
 0x43f   :  { %v2042_v35 = vadd.f32 %v2041_v19, %v3912_v7 }
 0x444   :  { %v1968_v50 = vpop.f32.mrf.mxu3 }
 0x445   :  { %v3915_v8 = vadd.f32 %v2017_v55, %v1968_v50 }
 0x447   :  { %v2043_v15 = vadd.f32 %v2042_v35, %v3915_v8 }
 0x44c   :  { %v1971_v52 = vpop.f32.mrf.mxu3 }
 0x44d   :  { %v3918_v48 = vadd.f32 %v2020_v30, %v1971_v52 }
 0x44f   :  { %v2044_v28 = vadd.f32 %v2043_v15, %v3918_v48 }
 0x454   :  { %v1973_v51 = vpop.f32.mrf.mxu3 }
 0x455   :  { %v3921_v60 = vadd.f32 %v2022_v40, %v1973_v51 }
 0x457   :  { %v2045_v12 = vadd.f32 %v2044_v28, %v3921_v60 }
 0x45c   :  { %v1976_v31 = vpop.f32.mrf.mxu3 }
 0x45d   :  { %v3924_v37 = vadd.f32 %v2025_v49, %v1976_v31 }
 0x45f   :  { %v2046_v54 = vadd.f32 %v2045_v12, %v3924_v37 }
 0x464   :  { %v1978_v11 = vpop.f32.mrf.mxu3 }
 0x465   :  { %v3927_v46 = vadd.f32 %v2027_v53, %v1978_v11 }
 0x467   :  { %v2047_v47 = vadd.f32 %v2046_v54, %v3927_v46 }
 0x46c   :  { %v1981_v41 = vpop.f32.mrf.mxu3 }
 0x46d   :  { %v3930_v39 = vadd.f32 %v2030_v23, %v1981_v41 }
 0x46f   :  { %v2048_v44 = vadd.f32 %v2047_v47, %v3930_v39 }
 0x474   :  { %v1983_v1 = vpop.f32.mrf.mxu3 }
 0x475   :  { %v3934_v61 = vadd.f32 %v2032_v18, %v1983_v1 }
 0x477   :  { %v2049_v59 = vadd.f32 %v2048_v44, %v3934_v61 }
 0x479   :  { %v2050_v3 = vrot.slane %v2049_v59, 4 }
 0x47b   :  { %v2051_v20 = vadd.f32 %v2050_v3, %v2049_v59 }
 0x47d   :  { %v2052_v6 = vrot.slane %v2051_v20, 2 }
 0x47f   :  { %v2053_v2 = vadd.f32 %v2052_v6, %v2051_v20 }
 0x481   :  { %v2054_v16 = vrot.slane %v2053_v2, 1 }
 0x483   :  { %v2055_v32 = vadd.f32 %v2054_v16, %v2053_v2 }
 0x485   :  { %v3938_v62 = vmul.f32 %v2055_v32, %v2790_v4 }
 0x487   :  { %v2057_v63 = vsub.f32 %v3893_v42, %v3938_v62  ;;  %v2058_v38 = vsub.f32 %v3891_v5, %v3938_v62  ;;  %v2059_v26 = vsub.f32 %v3895_v34, %v3938_v62  ;;  %v2060_v25 = vsub.f32 %v3899_v58, %v3938_v62 }
 0x488   :  { %v2061_v57 = vsub.f32 %v3889_v24, %v3938_v62  ;;  %v2062_v29 = vsub.f32 %v3903_v27, %v3938_v62  ;;  %v2063_v30 = vsub.f32 %v3906_v36, %v3938_v62  ;;  %v2064_v52 = vsub.f32 %v3909_v22, %v3938_v62 }
 0x489   :  { %v2073_v56 = vmul.f32 %v2057_v63, %v2057_v63  ;;  %v2074_v13 = vmul.f32 %v2058_v38, %v2058_v38  ;;  %v2075_v21 = vmul.f32 %v2059_v26, %v2059_v26  ;;  %v2076_v55 = vmul.f32 %v2060_v25, %v2060_v25 }
 0x48a   :  { %v2077_v50 = vmul.f32 %v2061_v57, %v2061_v57  ;;  %v2078_v51 = vmul.f32 %v2062_v29, %v2062_v29  ;;  %v2065_v10 = vsub.f32 %v3912_v7, %v3938_v62  ;;  %v2079_v31 = vmul.f32 %v2063_v30, %v2063_v30 }
 0x48b   :  { %v2089_v14 = vadd.f32 %v2074_v13, %v2073_v56  ;;  %v2066_v9 = vsub.f32 %v3915_v8, %v3938_v62  ;;  %v2080_v53 = vmul.f32 %v2064_v52, %v2064_v52  ;;  %v2067_v0 = vsub.f32 %v3918_v48, %v3938_v62 }
 0x48c   :  { %v2081_v11 = vmul.f32 %v2065_v10, %v2065_v10  ;;  %v2068_v19 = vsub.f32 %v3921_v60, %v3938_v62  ;;  %v2069_v15 = vsub.f32 %v3924_v37, %v3938_v62  ;;  %v2070_v12 = vsub.f32 %v3927_v46, %v3938_v62 }
 0x48d   :  { %v2090_v45 = vadd.f32 %v2089_v14, %v2075_v21  ;;  %v2082_v35 = vmul.f32 %v2066_v9, %v2066_v9  ;;  %v2083_v41 = vmul.f32 %v2067_v0, %v2067_v0  ;;  %v2071_v18 = vsub.f32 %v3930_v39, %v3938_v62 }
 0x48e   :  { %v2084_v54 = vmul.f32 %v2068_v19, %v2068_v19  ;;  %v2085_v1 = vmul.f32 %v2069_v15, %v2069_v15  ;;  %v2072_v59 = vsub.f32 %v3934_v61, %v3938_v62  ;;  %v2086_v3 = vmul.f32 %v2070_v12, %v2070_v12 }
 0x48f   :  { %v2091_v40 = vadd.f32 %v2090_v45, %v2076_v55  ;;  %v2087_v6 = vmul.f32 %v2071_v18, %v2071_v18 }
 0x490   :  { %v2088_v16 = vmul.f32 %v2072_v59, %v2072_v59 }
 0x491   :  { %v2092_v49 = vadd.f32 %v2091_v40, %v2077_v50  ;;  %v2111_v40 = vld [vmem:[%s4007_s8] sm:$0x1]  ;;  %s2635_s8 = smov [#allocation2]  }
 0x493   :  { %v2093_v43 = vadd.f32 %v2092_v49, %v2078_v51 }
 0x495   :  { %v2094_v17 = vadd.f32 %v2093_v43, %v2079_v31 }
 0x497   :  { %v2095_v33 = vadd.f32 %v2094_v17, %v2080_v53 }
 0x499   :  { %v2096_v23 = vadd.f32 %v2095_v33, %v2081_v11 }
 0x49b   :  { %v2097_v28 = vadd.f32 %v2096_v23, %v2082_v35 }
 0x49d   :  { %v2098_v47 = vadd.f32 %v2097_v28, %v2083_v41 }
 0x49f   :  { %v2099_v44 = vadd.f32 %v2098_v47, %v2084_v54 }
 0x4a1   :  { %v2100_v20 = vadd.f32 %v2099_v44, %v2085_v1 }
 0x4a3   :  { %v2101_v2 = vadd.f32 %v2100_v20, %v2086_v3 }
 0x4a5   :  { %v2102_v32 = vadd.f32 %v2101_v2, %v2087_v6 }
 0x4a7   :  { %v2103_v63 = vadd.f32 %v2102_v32, %v2088_v16 }
 0x4a9   :  { %v2104_v38 = vrot.slane %v2103_v63, 4 }
 0x4ab   :  { %v2105_v26 = vadd.f32 %v2104_v38, %v2103_v63 }
 0x4ad   :  { %v2106_v56 = vrot.slane %v2105_v26, 2 }
 0x4af   :  { %v2107_v13 = vadd.f32 %v2106_v56, %v2105_v26 }
 0x4b1   :  { %v2108_v25 = vrot.slane %v2107_v13, 1 }
 0x4b3   :  { %v2109_v57 = vadd.f32 %v2108_v25, %v2107_v13 }
 0x4b5   :  { %v2110_v21 = vmul.f32 %v2109_v57, %v2790_v4  ;;  %v2124_v4 = vld [vmem:[%s4008_s9] sm:$0x1]  ;;  %s2234_s9 = sshll.u32 %s2635_s8, 4  ;;  %s2235_s9 = int_to_ptr.vmem [resolvable:$true] %s2234_s9 }
 0x4b7   :  { %v2112_v14 = vadd.f32 1e-05, %v2110_v21 }
 0x4b9   :  { %2602 = vrsqrt.f32 %v2112_v14  ;;  %vm2119_vm9 = vweird.f32 %v2112_v14 }
 0x4bf   :  { %v2603_v29 = vpop.eup %2602 }
 0x4c0   :  { %v2114_v55 = vmul.f32 %v2603_v29, %v2112_v14  ;;  %vm2120_vm8 = vweird.f32 %v2603_v29 }
 0x4c1   :  { %vm2121_vm10 = vmor %vm2119_vm9, %vm2120_vm8 }
 0x4c2   :  { %v2115_v45 = vmul.f32 %v2603_v29, %v2114_v55 }
 0x4c4   :  { %v2116_v30 = vmul.f32 0.5, %v2115_v45 }
 0x4c6   :  { %v2117_v50 = vsub.f32 1.5, %v2116_v30 }
 0x4c8   :  { %v2118_v52 = vmul.f32 %v2603_v29, %v2117_v50 }
 0x4ca   :  { %v2122_v51 = vsel %vm2121_vm10, %v2603_v29, %v2118_v52 }
 0x4cb   :  { %v2123_v49 = vmul.f32 %v2122_v51, %v2111_v40 }
 0x4cd   :  { %v2125_v10 = vmul.f32 %v2123_v49, %v3938_v62  ;;  %v2128_v31 = vperm.slane %v2123_v49, 0 }
 0x4cf   :  { %v2126_v43 = vsub.f32 %v2124_v4, %v2125_v10  ;;  %v2138_v9 = vmul.f32 %v2128_v31, %v3912_v7  ;;  %v2139_v53 = vmul.f32 %v2128_v31, %v3915_v8  ;;  %v2140_v17 = vmul.f32 %v2128_v31, %v3918_v48 }
 0x4d0   :  { %v2141_v0 = vmul.f32 %v2128_v31, %v3921_v60  ;;  %v2142_v11 = vmul.f32 %v2128_v31, %v3924_v37  ;;  %v2143_v33 = vmul.f32 %v2128_v31, %v3927_v46  ;;  %v2144_v19 = vmul.f32 %v2128_v31, %v3930_v39 }
 0x4d1   :  { %v2145_v35 = vmul.f32 %v2128_v31, %v3934_v61  ;;  %v2147_v23 = vperm.slane %v2126_v43, 0  ;;  %v2130_v62 = vmul.f32 %v2128_v31, %v3893_v42  ;;  %v2131_v15 = vmul.f32 %v2128_v31, %v3891_v5 }
 0x4d2   :  { %v2132_v7 = vmul.f32 %v2128_v31, %v3895_v34  ;;  %v2133_v8 = vmul.f32 %v2128_v31, %v3899_v58  ;;  %v2134_v48 = vmul.f32 %v2128_v31, %v3889_v24  ;;  %v2135_v60 = vmul.f32 %v2128_v31, %v3903_v27 }
 0x4d3   :  { %v2157_v37 = vadd.f32 %v2147_v23, %v2138_v9  ;;  %v2158_v41 = vadd.f32 %v2147_v23, %v2139_v53  ;;  %v2159_v46 = vadd.f32 %v2147_v23, %v2140_v17  ;;  %v2160_v28 = vadd.f32 %v2147_v23, %v2141_v0 }
 0x4d4   :  { %v2161_v39 = vadd.f32 %v2147_v23, %v2142_v11  ;;  %v2162_v12 = vadd.f32 %v2147_v23, %v2143_v33  ;;  %v2163_v61 = vadd.f32 %v2147_v23, %v2144_v19  ;;  %v2164_v54 = vadd.f32 %v2147_v23, %v2145_v35 }
 0x4d5   :  { %v2173_v47 = vmul.f32 0.01, %v2157_v37  ;;  %v2174_v42 = vmul.f32 0.01, %v2158_v41  ;;  %v2175_v18 = vmul.f32 0.01, %v2159_v46  ;;  %v2136_v5 = vmul.f32 %v2128_v31, %v3906_v36 }
 0x4d6   :  { %v2176_v34 = vmul.f32 0.01, %v2160_v28  ;;  %v2177_v1 = vmul.f32 0.01, %v2161_v39  ;;  %v2178_v58 = vmul.f32 0.01, %v2162_v12  ;;  %v2137_v24 = vmul.f32 %v2128_v31, %v3909_v22 }
 0x4d7   :  { %v2179_v44 = vmul.f32 0.01, %v2163_v61  ;;  %v2180_v27 = vmul.f32 0.01, %v2164_v54  ;;  %v2189_v59 = vmax.f32 %v2157_v37, %v2173_v47  ;;  %v2190_v3 = vmax.f32 %v2158_v41, %v2174_v42 }
 0x4d8   :  { %v2191_v20 = vmax.f32 %v2159_v46, %v2175_v18  ;;  %v2192_v6 = vmax.f32 %v2160_v28, %v2176_v34  ;;  %v2193_v2 = vmax.f32 %v2161_v39, %v2177_v1  ;;  %v2194_v16 = vmax.f32 %v2162_v12, %v2178_v58 }
 0x4d9   :  { %v2195_v32 = vmax.f32 %v2163_v61, %v2179_v44  ;;  %v2196_v63 = vmax.f32 %v2164_v54, %v2180_v27  ;;  %v2149_v38 = vadd.f32 %v2147_v23, %v2130_v62  ;;  %v2150_v26 = vadd.f32 %v2147_v23, %v2131_v15 }
 0x4da   :  { %v2210_v56 = vmax.f32 %v2189_v59, %v2191_v20  ;;  %v2211_v13 = vmax.f32 %v2190_v3, %v2192_v6  ;;  %v2151_v36 = vadd.f32 %v2147_v23, %v2132_v7  ;;  %v2152_v25 = vadd.f32 %v2147_v23, %v2133_v8 }
 0x4db   :  { %v2153_v57 = vadd.f32 %v2147_v23, %v2134_v48  ;;  %v2154_v21 = vadd.f32 %v2147_v23, %v2135_v60  ;;  %v2155_v14 = vadd.f32 %v2147_v23, %v2136_v5  ;;  %v2156_v22 = vadd.f32 %v2147_v23, %v2137_v24 }
 0x4dc   :  { %v2212_v29 = vmax.f32 %v2210_v56, %v2193_v2  ;;  %v2213_v55 = vmax.f32 %v2211_v13, %v2194_v16  ;;  %v2165_v45 = vmul.f32 0.01, %v2149_v38  ;;  %v2166_v30 = vmul.f32 0.01, %v2150_v26 }
 0x4dd   :  { %v2167_v50 = vmul.f32 0.01, %v2151_v36  ;;  %v2168_v40 = vmul.f32 0.01, %v2152_v25  ;;  %v2169_v52 = vmul.f32 0.01, %v2153_v57 }
 0x4de   :  { %v2214_v51 = vmax.f32 %v2212_v29, %v2195_v32  ;;  %v2215_v49 = vmax.f32 %v2213_v55, %v2196_v63  ;;  %v2170_v4 = vmul.f32 0.01, %v2154_v21  ;;  %v2171_v10 = vmul.f32 0.01, %v2155_v14 }
 0x4df   :  { %v2181_v31 = vmax.f32 %v2149_v38, %v2165_v45  ;;  %v2182_v43 = vmax.f32 %v2150_v26, %v2166_v30  ;;  %v2183_v9 = vmax.f32 %v2151_v36, %v2167_v50  ;;  %v2172_v17 = vmul.f32 0.01, %v2156_v22 }
 0x4e0   :  { %v2216_v53 = vmax.f32 %v2214_v51, %v2215_v49  ;;  %v2184_v0 = vmax.f32 %v2152_v25, %v2168_v40  ;;  %v2185_v11 = vmax.f32 %v2153_v57, %v2169_v52  ;;  %v2186_v19 = vmax.f32 %v2154_v21, %v2170_v4 }
 0x4e1   :  { %v2197_v33 = vmax.f32 %v2181_v31, %v2183_v9  ;;  %v2187_v62 = vmax.f32 %v2155_v14, %v2171_v10  ;;  %v2188_v7 = vmax.f32 %v2156_v22, %v2172_v17 }
 0x4e2   :  { %v2198_v35 = vmax.f32 %v2182_v43, %v2184_v0  ;;  %v2217_v23 = vrot.slane %v2216_v53, 4 }
 0x4e3   :  { %v2199_v15 = vmax.f32 %v2197_v33, %v2185_v11 }
 0x4e4   :  { %v2200_v8 = vmax.f32 %v2198_v35, %v2186_v19  ;;  %v2218_v48 = vmax.f32 %v2216_v53, %v2217_v23 }
 0x4e5   :  { %v2201_v60 = vmax.f32 %v2199_v15, %v2187_v62 }
 0x4e6   :  { %v2202_v37 = vmax.f32 %v2200_v8, %v2188_v7  ;;  %v2219_v41 = vrot.slane %v2218_v48, 2 }
 0x4e8   :  { %v2203_v46 = vmax.f32 %v2201_v60, %v2202_v37  ;;  %v2220_v39 = vmax.f32 %v2218_v48, %v2219_v41 }
 0x4ea   :  { %v2204_v28 = vrot.slane %v2203_v46, 4  ;;  %v2221_v54 = vrot.slane %v2220_v39, 1 }
 0x4ec   :  { %v2205_v12 = vmax.f32 %v2203_v46, %v2204_v28  ;;  %v2222_v18 = vmax.f32 %v2220_v39, %v2221_v54 }
 0x4ee   :  { %v2206_v61 = vrot.slane %v2205_v12, 2 }
 0x4f0   :  { %v2207_v47 = vmax.f32 %v2205_v12, %v2206_v61 }
 0x4f2   :  { %v2208_v42 = vrot.slane %v2207_v47, 1 }
 0x4f4   :  { %v2209_v5 = vmax.f32 %v2207_v47, %v2208_v42 }
 0x4f6   :  { %v2226_v34 = vsel %vm2225_vm11, %v2222_v18, %v2209_v5 }
 0x4f7   :  { %2228 = vst [vmem:[#allocation2] sm:$0x3] %v2226_v34 }
 0x4f8   :  { %2239 = dma.vmem_to_hbm [thread:$0]  %s2235_s9, 32, %s2237_s5, [#allocation3]  }
 0x4f9   :  { %2628 = dma.done.wait [#allocation3], 32  }
 0x4fa   :  { %2629 = vsyncadd [#allocation3], 4294967264 }
 0x4fb   :  { %2244 = vsyncpa [#allocation3], 1 }

</bundles_post_ra>
